<compile_context>
chip_gen: v7x
topology: tpu7x:2x2x1
jax: 0.10.0
libtpu: 0.0.40
codegen_flags: <defaults>
</compile_context>

<pallas_src>
import functools

import jax
import jax.numpy as jnp
from jax import lax
from jax.experimental import pallas as pl
from jax.experimental.pallas import tpu as pltpu


_LANE = 128  # row-padding / D-tiling unit for the concatenated table


# ---------------------------------------------------------------------------
# Init-time parameter preparation (runs once, NOT per forward call).
# ---------------------------------------------------------------------------
def init_feature_sum_params(tables, table_dtype=jnp.bfloat16):
    """Concatenate per-feature embedding tables into one padded table.

    tables: list of [dim_f, H] float arrays (one nn.Embedding weight each).
    Returns (big_table [D_pad, H] table_dtype, offsets [F] int32, d_total).
    """
    dims = [int(t.shape[0]) for t in tables]
    # Plain-Python cumulative offsets (concrete ints, never traced).
    offs, acc = [], 0
    for d in dims:
        offs.append(acc)
        acc += d
    d_total = acc

    big = jnp.concatenate([t.astype(jnp.float32) for t in tables], axis=0)
    # Pad rows to a multiple of _LANE with zeros: padded rows are never
    # addressed (all offset indices stay < d_total) and contribute nothing.
    d_pad = ((d_total + _LANE - 1) // _LANE) * _LANE
    if d_pad != d_total:
        big = jnp.pad(big, ((0, d_pad - d_total), (0, 0)))
    big = big.astype(table_dtype)
    offsets = jnp.asarray(offs, dtype=jnp.int32)
    return big, offsets, d_total


# ---------------------------------------------------------------------------
# Kernel
# ---------------------------------------------------------------------------
def _feature_sum_kernel(idx_ref, table_ref, out_ref, acc_ref, *,
                        num_features, tile_d):
    # idx_ref:   (tile_n, F) int32, already offset into the concatenated table
    # table_ref: (tile_d, H)  bf16  -- k-th row slab of the big table
    # out_ref:   (tile_n, H)  f32
    # acc_ref:   (tile_n, H)  f32 VMEM scratch, resident across the k axis
    k = pl.program_id(1)

    @pl.when(k == 0)
    def _():
        acc_ref[...] = jnp.zeros_like(acc_ref)

    # Local row ids inside this table slab.
    idx = idx_ref[...] - k * tile_d                       # (tn, F) int32
    tn = idx.shape[0]
    iota = lax.broadcasted_iota(jnp.int32, (tn, tile_d), 1)

    # Multi-hot counts: cheap integer adds of bool compares on the VPU,
    # a single cast to the matmul dtype at the end.
    counts = (idx[:, 0:1] == iota).astype(jnp.int32)
    for f in range(1, num_features):                      # F is small & static
        counts = counts + (idx[:, f:f + 1] == iota).astype(jnp.int32)
    multi_hot = counts.astype(table_ref.dtype)

    acc_ref[...] += jnp.dot(multi_hot, table_ref[...],
                            preferred_element_type=jnp.float32)

    @pl.when(k == pl.num_programs(1) - 1)
    def _():
        out_ref[...] = acc_ref[...].astype(out_ref.dtype)


# ---------------------------------------------------------------------------
# Forward wrapper
# ---------------------------------------------------------------------------
def _pick_d_tile(d_pad, max_tile_d):
    """Largest multiple of _LANE that divides d_pad and is <= max_tile_d."""
    m = d_pad // _LANE
    best = 1
    for t in range(1, m + 1):
        if m % t == 0 and t * _LANE <= max_tile_d:
            best = t
    return best * _LANE


def feature_sum_encoder(x_idx, big_table, offsets, *, tile_n=256, tile_d=512):
    """x_idx: [N, F] int32 per-feature vocab indices (caller flattens leading
    dims).  big_table / offsets come from init_feature_sum_params.
    Returns [N, H] float32 = sum_f Embedding_f(x[:, f])."""
    n, num_features = x_idx.shape
    d_pad, hidden = big_table.shape
    assert offsets.shape == (num_features,)

    # Offset every feature's index into its slice of the concatenated table.
    idx = x_idx.astype(jnp.int32) + offsets[None, :]                # (N, F)

    # --- tile sizes / padding (no divisibility assert) ---------------------
    n_pad8 = ((n + 7) // 8) * 8
    tn = min(((tile_n + 7) // 8) * 8, n_pad8)            # multiple of 8
    n_padded = ((n + tn - 1) // tn) * tn
    if n_padded != n:
        idx = jnp.pad(idx, ((0, n_padded - n), (0, 0)))  # extra rows sliced off
    td = _pick_d_tile(d_pad, max(int(tile_d), _LANE))
    grid = (n_padded // tn, d_pad // td)

    kernel = functools.partial(_feature_sum_kernel,
                               num_features=num_features, tile_d=td)

    # VMEM budget: double-buffered ins/outs + accumulator + multi_hot
    # intermediates.  Only raise the scoped limit when the default (~32 MiB,
    # the v7x-safe value) would not do.
    bpe_tab = jnp.dtype(big_table.dtype).itemsize
    est = (2 * tn * num_features * 4          # idx tiles
           + 2 * td * hidden * bpe_tab        # table slabs
           + 2 * tn * hidden * 4              # output tiles
           + tn * hidden * 4                  # accumulator
           + tn * td * (4 + bpe_tab))         # counts + multi_hot
    cparams = dict(dimension_semantics=("parallel", "arbitrary"))
    if est > 30 * 1024 * 1024:
        cparams["vmem_limit_bytes"] = int(est * 1.25)

    out = pl.pallas_call(
        kernel,
        out_shape=jax.ShapeDtypeStruct((n_padded, hidden), jnp.float32),
        grid_spec=pltpu.PrefetchScalarGridSpec(
            num_scalar_prefetch=0,
            grid=grid,
            in_specs=[
                pl.BlockSpec((tn, num_features), lambda i, k: (i, 0)),
                pl.BlockSpec((td, hidden), lambda i, k: (k, 0)),
            ],
            out_specs=pl.BlockSpec((tn, hidden), lambda i, k: (i, 0)),
            scratch_shapes=[pltpu.VMEM((tn, hidden), jnp.float32)],
        ),
        compiler_params=pltpu.CompilerParams(**cparams),
    )(idx, big_table)
    return out[:n]


# ---------------------------------------------------------------------------
# Demo / self-check
# ---------------------------------------------------------------------------
if __name__ == "__main__":
    feature_dims = [5, 7, 3, 6]        # F = 4 feature slots
    hidden_size = 32
    n_nodes = 300                      # deliberately NOT a tile multiple

    # Deterministic nn.Embedding-like init (N(0,1) weights).
    key = jax.random.PRNGKey(0)
    tables = []
    for dim in feature_dims:
        key, sub = jax.random.split(key)
        tables.append(jax.random.normal(sub, (dim, hidden_size), jnp.float32))

    big_table, offsets, d_total = init_feature_sum_params(tables)

    key = jax.random.PRNGKey(0)
    cols = []
    for dim in feature_dims:
        key, sub = jax.random.split(key)
        cols.append(jax.random.randint(sub, (n_nodes, 1), 0, dim, jnp.int32))
    x = jnp.concatenate(cols, axis=1)                     # (N, F) int32

    out = feature_sum_encoder(x, big_table, offsets, tile_n=256, tile_d=512)
    out = jax.block_until_ready(out)

    # Reference 1: same bf16-cast weights the kernel uses -> exact match.
    tab_f32 = big_table.astype(jnp.float32)
    idx_off = x + offsets[None, :]
    ref_q = jnp.zeros((n_nodes, hidden_size), jnp.float32)
    for f in range(len(feature_dims)):
        ref_q = ref_q + tab_f32[idx_off[:, f]]

    # Reference 2: original f32 weights (bounds the bf16 quantization error).
    ref_f32 = jnp.zeros((n_nodes, hidden_size), jnp.float32)
    for f in range(len(feature_dims)):
        ref_f32 = ref_f32 + tables[f][x[:, f]]

    assert out.shape == (n_nodes, hidden_size)
    assert jnp.allclose(out, ref_q, atol=1e-5, rtol=1e-5), \
        float(jnp.max(jnp.abs(out - ref_q)))
    assert jnp.allclose(out, ref_f32, atol=1e-1, rtol=0.0), \
        float(jnp.max(jnp.abs(out - ref_f32)))

    print("KERNEL_OK")
</pallas_src>

<mosaic_0001>
module attributes {stable_mosaic.version = 11 : i64} {
  func.func @_feature_sum_kernel(%arg0: i32, %arg1: i32, %arg2: memref<256x4xi32, #tpu.memory_space<vmem>>, %arg3: memref<128x32xbf16, #tpu.memory_space<vmem>>, %arg4: memref<256x32xf32, #tpu.memory_space<vmem>>, %arg5: memref<256x32xf32, #tpu.memory_space<vmem>>) attributes {dimension_semantics = [#tpu.dimension_semantics<parallel>, #tpu.dimension_semantics<arbitrary>], iteration_bounds = array<i64: 2, 1>, scalar_prefetch = 0 : i64, scratch_operands = 1 : i64, tpu.core_type = #tpu.core_type<tc>, window_params = [{transform_indices = @transform_0, window_bounds = array<i64: 256, 4>}, {transform_indices = @transform_1, window_bounds = array<i64: 128, 32>}, {transform_indices = @transform_2, window_bounds = array<i64: 256, 32>}]} {
    %c0_i32 = arith.constant 0 : i32
    %0 = arith.cmpi eq, %arg1, %c0_i32 : i32
    %1 = arith.extui %0 : i1 to i32
    %c0_i32_0 = arith.constant 0 : i32
    %2 = arith.cmpi ne, %1, %c0_i32_0 : i32
    scf.if %2 {
      %cst_10 = arith.constant 0.000000e+00 : f32
      %36 = vector.broadcast %cst_10 : f32 to vector<256x32xf32>
      %c0_11 = arith.constant 0 : index
      %c0_12 = arith.constant 0 : index
      %37 = vector.load %arg5[%c0_11, %c0_12] : memref<256x32xf32, #tpu.memory_space<vmem>>, vector<256x32xf32>
      tpu.vector_store %arg5[%c0_11, %c0_12], %36 {strides = array<i32>} : memref<256x32xf32, #tpu.memory_space<vmem>>, vector<256x32xf32>,
    } else {
    }
    %c0 = arith.constant 0 : index
    %c0_1 = arith.constant 0 : index
    %3 = vector.load %arg2[%c0, %c0_1] : memref<256x4xi32, #tpu.memory_space<vmem>>, vector<256x4xi32>
    %c128_i32 = arith.constant 128 : i32
    %4 = arith.muli %arg1, %c128_i32 : i32
    %5 = vector.broadcast %4 : i32 to vector<256x4xi32>
    %6 = arith.subi %3, %5 : vector<256x4xi32>
    %7 = tpu.iota {dimensions = array<i32: 1>} : vector<256x128xi32>
    %8 = vector.extract_strided_slice %6 {offsets = [0, 0], sizes = [256, 1], strides = [1, 1]} : vector<256x4xi32> to vector<256x1xi32>
    %9 = vector.broadcast %8 : vector<256x1xi32> to vector<256x128xi32>
    %10 = arith.cmpi eq, %9, %7 : vector<256x128xi32>
    %11 = arith.extui %10 : vector<256x128xi1> to vector<256x128xi32>
    %12 = vector.extract_strided_slice %6 {offsets = [0, 1], sizes = [256, 1], strides = [1, 1]} : vector<256x4xi32> to vector<256x1xi32>
    %13 = vector.broadcast %12 : vector<256x1xi32> to vector<256x128xi32>
    %14 = arith.cmpi eq, %13, %7 : vector<256x128xi32>
    %15 = arith.extui %14 : vector<256x128xi1> to vector<256x128xi32>
    %16 = arith.addi %11, %15 : vector<256x128xi32>
    %17 = vector.extract_strided_slice %6 {offsets = [0, 2], sizes = [256, 1], strides = [1, 1]} : vector<256x4xi32> to vector<256x1xi32>
    %18 = vector.broadcast %17 : vector<256x1xi32> to vector<256x128xi32>
    %19 = arith.cmpi eq, %18, %7 : vector<256x128xi32>
    %20 = arith.extui %19 : vector<256x128xi1> to vector<256x128xi32>
    %21 = arith.addi %16, %20 : vector<256x128xi32>
    %22 = vector.extract_strided_slice %6 {offsets = [0, 3], sizes = [256, 1], strides = [1, 1]} : vector<256x4xi32> to vector<256x1xi32>
    %23 = vector.broadcast %22 : vector<256x1xi32> to vector<256x128xi32>
    %24 = arith.cmpi eq, %23, %7 : vector<256x128xi32>
    %25 = arith.extui %24 : vector<256x128xi1> to vector<256x128xi32>
    %26 = arith.addi %21, %25 : vector<256x128xi32>
    %27 = arith.sitofp %26 : vector<256x128xi32> to vector<256x128xbf16>
    %c0_2 = arith.constant 0 : index
    %c0_3 = arith.constant 0 : index
    %28 = vector.load %arg5[%c0_2, %c0_3] : memref<256x32xf32, #tpu.memory_space<vmem>>, vector<256x32xf32>
    %c0_4 = arith.constant 0 : index
    %c0_5 = arith.constant 0 : index
    %29 = vector.load %arg3[%c0_4, %c0_5] : memref<128x32xbf16, #tpu.memory_space<vmem>>, vector<128x32xbf16>
    %cst = arith.constant dense<0.000000e+00> : vector<256x32xf32>
    %30 = tpu.matmul %27, %29, %cst {dimension_numbers = #tpu.dot_dimension_numbers<[1], [0], [0], [1], [0, 0, 1, 1], [], []>} : vector<256x128xbf16>, vector<128x32xbf16>, vector<256x32xf32> -> vector<256x32xf32>
    %31 = arith.addf %28, %30 : vector<256x32xf32>
    %c0_6 = arith.constant 0 : index
    %c0_7 = arith.constant 0 : index
    %32 = vector.load %arg5[%c0_6, %c0_7] : memref<256x32xf32, #tpu.memory_space<vmem>>, vector<256x32xf32>
    tpu.vector_store %arg5[%c0_6, %c0_7], %31 {strides = array<i32>} : memref<256x32xf32, #tpu.memory_space<vmem>>, vector<256x32xf32>,
    %c0_i32_8 = arith.constant 0 : i32
    %33 = arith.cmpi eq, %arg1, %c0_i32_8 : i32
    %34 = arith.extui %33 : i1 to i32
    %c0_i32_9 = arith.constant 0 : i32
    %35 = arith.cmpi ne, %34, %c0_i32_9 : i32
    scf.if %35 {
      %c0_10 = arith.constant 0 : index
      %c0_11 = arith.constant 0 : index
      %36 = vector.load %arg5[%c0_10, %c0_11] : memref<256x32xf32, #tpu.memory_space<vmem>>, vector<256x32xf32>
      %c0_12 = arith.constant 0 : index
      %c0_13 = arith.constant 0 : index
      %37 = vector.load %arg4[%c0_12, %c0_13] : memref<256x32xf32, #tpu.memory_space<vmem>>, vector<256x32xf32>
      tpu.vector_store %arg4[%c0_12, %c0_13], %36 {strides = array<i32>} : memref<256x32xf32, #tpu.memory_space<vmem>>, vector<256x32xf32>,
    } else {
    }
    return
  }
  func.func @transform_0(%arg0: i32, %arg1: i32) -> (i32, i32) {
    %c0_i32 = arith.constant 0 : i32
    %c0_i32_0 = arith.constant 0 : i32
    return %arg0, %c0_i32 : i32, i32
  }
  func.func @transform_1(%arg0: i32, %arg1: i32) -> (i32, i32) {
    %c0_i32 = arith.constant 0 : i32
    %c0_i32_0 = arith.constant 0 : i32
    return %arg1, %c0_i32 : i32, i32
  }
  func.func @transform_2(%arg0: i32, %arg1: i32) -> (i32, i32) {
    %c0_i32 = arith.constant 0 : i32
    %c0_i32_0 = arith.constant 0 : i32
    return %arg0, %c0_i32 : i32, i32
  }
}

</mosaic_0001>

<bundles_post_ra>
// kernel: tpu_custom_call.1
= control target key start
LH: loop header
LB: loop body
LE: loop exit
PB: predicated region body
PF: predicated region fallthrough
CT: control target
= control target key end

     0   :  { %s1746_s9 = smov 0   ;;  %s1748_s10 = smov 0   ;;  %s2777_s0 = inlined_call_operand.vmem [shape: s32[512,4], index: 0, kind: input, shape index: {}]   ;;  %s2778_s1 = inlined_call_operand.vmem [shape: bf16[128,32], index: 1, kind: input, shape index: {}]   ;;  %s2779_s2 = inlined_call_operand.vmem [shape: f32[512,32], index: 2, kind: output, shape index: {}]  }
   0x1   :  { %s1750_s11 = smov 0  }
   0x2 LB: > { %s24_s12 = sadd.s32 1, %s1720_s10  ;;  %p1545_p0 = scmp.ge.s32.totalorder %s1724_s11, 1  ;;  %s1724_s11 = sphi %s1750_s11, %s12_s11   ;;  %s1720_s10 = sphi %s1748_s10, %s2820_s10   ;;  %s1716_s9 = sphi %s1746_s9, %s2819_s9  }
   0x3   : > { %p26_p1 = scmp.ge.s32.totalorder %s24_s12, 2  ;;  %p136_p2 = scmp.lt.s32.totalorder %s1724_s11, 3 }
   0x5   : > { %s2822_s12 = smov (%p26_p1, %s24_s12), 0  ;;  %p137_p3 = pnand %p1545_p0, %p136_p2 }
   0x7   : > { %140 = sbr.rel (%p137_p3) target bundleno = 671 (0x29f), region = 28 }
   0xe   : > { %s1546_s13 = sshll.u32 %s1716_s9, 5  ;;  %v2782_v0 = vmov 0   ;;  %v2780_v33 = vmov 1   ;;  %v2781_v34 = vmov 2   ;;  %v2784_v35 = vmov 3   ;;  %v1694_v54 = vld [vmem:[%s2778_s1] sm:$0xff]  }
   0xf   : > { %1678 = vset.pattern.permute.xlu1 %v2782_v0  ;;  %1677 = vset.pattern.permute.xlu0 %v2782_v0  ;;  %p164_p4 = scmp.lt.s32.totalorder %s1546_s13, 63  ;;  %v1695_v57 = vld [vmem:[%s2778_s1 + $0x8] sm:$0xff]   ;;  %v1696_v60 = vld [vmem:[%s2778_s1 + $0x10] sm:$0xff]   ;;  %v1697_v63 = vld [vmem:[%s2778_s1 + $0x18] sm:$0xff]   ;;  %v285_v0 = vlaneseq }
  0x10   : > { %1584 = vmatprep.subr.bf16.mxu0 %v1694_v54  ;;  %1632 = vmatprep.subr.bf16.mxu1 %v1694_v54 }
  0x11   : > { %s2824_s13 = smov (!%p164_p4, %s1546_s13), 63  ;;  %1585 = vmatpush3.bf16.msra.mxu0 %v1694_v54  ;;  %1640 = vmatpush3.bf16.msra.mxu1 %v1694_v54 }
  0x12   : > { %s1547_s14 = sshll.u32 %s2824_s13, 3  ;;  %1586 = vmatprep.subr.bf16.mxu0 %v1695_v57  ;;  %1633 = vmatprep.subr.bf16.mxu1 %v1695_v57 }
  0x13   : > { %s1774_s17 = scalar_lea.vmem %s2777_s0, %s1547_s14  ;;  %s2675_s8 = scalar_lea.vmem %s2779_s2, %s1547_s14 }
  0x14   : > { %v1777_v1 = vld [vmem:[%s1774_s17 + $0x10] sm:$0xff]  ;;  %v1780_v2 = vld [vmem:[%s1774_s17] sm:$0xff]  ;;  %v1785_v3 = vld [vmem:[%s1774_s17 + $0x18] sm:$0xff] }
  0x15   : > { %294 = vperm.xlu1 %1678, %v1777_v1   ;;  %288 = vperm.xlu0 %1677, %v1780_v2   ;;  %v1788_v4 = vld [vmem:[%s1774_s17 + $0x8] sm:$0xff]  ;;  %v1796_v6 = vld [vmem:[%s1774_s17 + $0x20] sm:$0xff]  ;;  %v1801_v7 = vld [vmem:[%s1774_s17 + $0x38] sm:$0xff] }
  0x16   : > { %v1793_v5 = vld [vmem:[%s1774_s17 + $0x28] sm:$0xff]  ;;  %v1804_v8 = vld [vmem:[%s1774_s17 + $0x30] sm:$0xff]  ;;  %v1812_v10 = vld [vmem:[%s1774_s17 + $0x40] sm:$0xff]  ;;  %1587 = vmatpush3.bf16.msra.mxu0 %v1695_v57  ;;  %1641 = vmatpush3.bf16.msra.mxu1 %v1695_v57 }
  0x17   : > { %v1809_v9 = vld [vmem:[%s1774_s17 + $0x48] sm:$0xff]  ;;  %v1817_v11 = vld [vmem:[%s1774_s17 + $0x58] sm:$0xff]  ;;  %v1820_v12 = vld [vmem:[%s1774_s17 + $0x50] sm:$0xff]  ;;  %1588 = vmatprep.subr.bf16.mxu0 %v1696_v60  ;;  %1634 = vmatprep.subr.bf16.mxu1 %v1696_v60 }
  0x18   : > { %v1825_v13 = vld [vmem:[%s1774_s17 + $0x68] sm:$0xff]  ;;  %v1828_v14 = vld [vmem:[%s1774_s17 + $0x60] sm:$0xff]  ;;  %v1833_v15 = vld [vmem:[%s1774_s17 + $0x78] sm:$0xff] }
  0x19   : > { %297 = vperm.xlu1 %1678, %v1785_v3   ;;  %291 = vperm.xlu0 %1677, %v1788_v4   ;;  %v1836_v16 = vld [vmem:[%s1774_s17 + $0x70] sm:$0xff]  ;;  %v1841_v17 = vld [vmem:[%s1774_s17 + $0x88] sm:$0xff]  ;;  %v1844_v18 = vld [vmem:[%s1774_s17 + $0x80] sm:$0xff] }
  0x1a   : > { %v1849_v19 = vld [vmem:[%s1774_s17 + $0x98] sm:$0xff]  ;;  %v1852_v20 = vld [vmem:[%s1774_s17 + $0x90] sm:$0xff]  ;;  %v1857_v21 = vld [vmem:[%s1774_s17 + $0xa8] sm:$0xff]  ;;  %1589 = vmatpush3.bf16.msra.mxu0 %v1696_v60  ;;  %1642 = vmatpush3.bf16.msra.mxu1 %v1696_v60 }
  0x1b   : > { %v1860_v22 = vld [vmem:[%s1774_s17 + $0xa0] sm:$0xff]  ;;  %v1865_v23 = vld [vmem:[%s1774_s17 + $0xb8] sm:$0xff]  ;;  %v1868_v24 = vld [vmem:[%s1774_s17 + $0xb0] sm:$0xff]  ;;  %1590 = vmatprep.subr.bf16.mxu0 %v1697_v63  ;;  %1635 = vmatprep.subr.bf16.mxu1 %v1697_v63 }
  0x1c   : > { %v1873_v25 = vld [vmem:[%s1774_s17 + $0xc8] sm:$0xff]  ;;  %v1876_v26 = vld [vmem:[%s1774_s17 + $0xc0] sm:$0xff]  ;;  %v1881_v27 = vld [vmem:[%s1774_s17 + $0xd8] sm:$0xff] }
  0x1d   : > { %303 = vperm.xlu1 %1678, %v1793_v5   ;;  %300 = vperm.xlu0 %1677, %v1796_v6   ;;  %v1884_v28 = vld [vmem:[%s1774_s17 + $0xd0] sm:$0xff]  ;;  %v1889_v29 = vld [vmem:[%s1774_s17 + $0xe8] sm:$0xff]  ;;  %v1892_v30 = vld [vmem:[%s1774_s17 + $0xe0] sm:$0xff] }
  0x1e   : > { %v1897_v31 = vld [vmem:[%s1774_s17 + $0xf8] sm:$0xff]  ;;  %v1900_v32 = vld [vmem:[%s1774_s17 + $0xf0] sm:$0xff]  ;;  %1591 = vmatpush3.bf16.msra.mxu0 %v1697_v63  ;;  %1643 = vmatpush3.bf16.msra.mxu1 %v1697_v63 }
  0x1f   : > { %v1700_v57 = vld [vmem:[%s2778_s1 + $0x30] sm:$0xff]  }
  0x21   : > { %309 = vperm.xlu1 %1678, %v1801_v7   ;;  %306 = vperm.xlu0 %1677, %v1804_v8  }
  0x25   : > { %315 = vperm.xlu1 %1678, %v1809_v9   ;;  %312 = vperm.xlu0 %1677, %v1812_v10  }
  0x29   : > { %321 = vperm.xlu1 %1678, %v1817_v11   ;;  %318 = vperm.xlu0 %1677, %v1820_v12  }
  0x2d   : > { %327 = vperm.xlu1 %1678, %v1825_v13   ;;  %324 = vperm.xlu0 %1677, %v1828_v14  }
  0x31   : > { %333 = vperm.xlu1 %1678, %v1833_v15   ;;  %330 = vperm.xlu0 %1677, %v1836_v16  }
  0x35   : > { %339 = vperm.xlu1 %1678, %v1841_v17   ;;  %336 = vperm.xlu0 %1677, %v1844_v18  }
  0x39   : > { %345 = vperm.xlu1 %1678, %v1849_v19   ;;  %342 = vperm.xlu0 %1677, %v1852_v20  }
  0x3d   : > { %351 = vperm.xlu1 %1678, %v1857_v21   ;;  %348 = vperm.xlu0 %1677, %v1860_v22  }
  0x41   : > { %357 = vperm.xlu1 %1678, %v1865_v23   ;;  %354 = vperm.xlu0 %1677, %v1868_v24  }
  0x45   : > { %363 = vperm.xlu1 %1678, %v1873_v25   ;;  %360 = vperm.xlu0 %1677, %v1876_v26  }
  0x49   : > { %369 = vperm.xlu1 %1678, %v1881_v27   ;;  %366 = vperm.xlu0 %1677, %v1884_v28  }
  0x4d   : > { %375 = vperm.xlu1 %1678, %v1889_v29   ;;  %372 = vperm.xlu0 %1677, %v1892_v30  }
  0x51   : > { %381 = vperm.xlu1 %1678, %v1897_v31   ;;  %378 = vperm.xlu0 %1677, %v1900_v32  }
  0x55   : > { %1680 = vset.pattern.permute.xlu1 %v2780_v33  ;;  %1679 = vset.pattern.permute.xlu0 %v2780_v33 }
  0x56   : > { %451 = vperm.xlu1 %1680, %v1788_v4   ;;  %448 = vperm.xlu0 %1679, %v1780_v2  }
  0x5a   : > { %454 = vperm.xlu1 %1680, %v1777_v1   ;;  %457 = vperm.xlu0 %1679, %v1785_v3  }
  0x5e   : > { %460 = vperm.xlu1 %1680, %v1796_v6   ;;  %463 = vperm.xlu0 %1679, %v1793_v5  }
  0x62   : > { %466 = vperm.xlu1 %1680, %v1804_v8   ;;  %469 = vperm.xlu0 %1679, %v1801_v7  }
  0x66   : > { %472 = vperm.xlu1 %1680, %v1812_v10   ;;  %475 = vperm.xlu0 %1679, %v1809_v9  }
  0x6a   : > { %478 = vperm.xlu1 %1680, %v1820_v12   ;;  %481 = vperm.xlu0 %1679, %v1817_v11  }
  0x6e   : > { %484 = vperm.xlu1 %1680, %v1828_v14   ;;  %487 = vperm.xlu0 %1679, %v1825_v13  }
  0x72   : > { %490 = vperm.xlu1 %1680, %v1836_v16   ;;  %496 = vperm.xlu0 %1679, %v1844_v18  }
  0x76   : > { %499 = vperm.xlu1 %1680, %v1841_v17   ;;  %502 = vperm.xlu0 %1679, %v1852_v20  }
  0x7a   : > { %505 = vperm.xlu1 %1680, %v1849_v19   ;;  %508 = vperm.xlu0 %1679, %v1860_v22  }
  0x7e   : > { %1681 = vset.pattern.permute.xlu1 %v2781_v34  ;;  %517 = vperm.xlu0 %1679, %v1865_v23  }
  0x7f   : > { %643 = vperm.xlu1 %1681, %v1788_v4  }
  0x82   : > { %523 = vperm.xlu0 %1679, %v1873_v25  }
  0x83   : > { %688 = vperm.xlu1 %1681, %v1844_v18  }
  0x86   : > { %532 = vperm.xlu0 %1679, %v1892_v30  }
  0x87   : > { %646 = vperm.xlu1 %1681, %v1777_v1  }
  0x8a   : > { %538 = vperm.xlu0 %1679, %v1900_v32  }
  0x8b   : > { %694 = vperm.xlu1 %1681, %v1852_v20  }
  0x8e   : > { %1690 = vset.pattern.permute.xlu0 %v2781_v34 }
  0x8f   : > { %1682 = vset.pattern.permute.xlu1 %v2784_v35  ;;  %640 = vperm.xlu0 %1690, %v1780_v2  }
  0x90   : > { %832 = vperm.xlu1 %1682, %v1780_v2  }
  0x93   : > { %691 = vperm.xlu0 %1690, %v1841_v17  }
  0x94   : > { %v1940_v36 = vpop.permute.xlu1 %294  ;;  %880 = vperm.xlu1 %1682, %v1844_v18   ;;  %v1943_v37 = vpop.permute.xlu0 %288 }
  0x97   : > { %649 = vperm.xlu0 %1690, %v1785_v3  }
  0x98   : > { %v1946_v38 = vpop.permute.xlu1 %297  ;;  %883 = vperm.xlu1 %1682, %v1841_v17   ;;  %v1949_v39 = vpop.permute.xlu0 %291  ;;  %v1698_v17 = vld [vmem:[%s2778_s1 + $0x20] sm:$0xff]  }
  0x99   : > { %1592 = vmatprep.subr.bf16.mxu0 %v1698_v17  ;;  %1636 = vmatprep.subr.bf16.mxu1 %v1698_v17 }
  0x9a   : > { %1593 = vmatpush3.bf16.msra.mxu0 %v1698_v17  ;;  %1644 = vmatpush3.bf16.msra.mxu1 %v1698_v17 }
  0x9b   : > { %697 = vperm.xlu0 %1690, %v1849_v19  }
  0x9c   : > { %v1952_v40 = vpop.permute.xlu1 %303  ;;  %841 = vperm.xlu1 %1682, %v1785_v3   ;;  %v1955_v41 = vpop.permute.xlu0 %300 }
  0x9f   : > { %655 = vperm.xlu0 %1690, %v1793_v5  }
  0xa0   : > { %v1958_v42 = vpop.permute.xlu1 %309  ;;  %889 = vperm.xlu1 %1682, %v1849_v19   ;;  %v1961_v43 = vpop.permute.xlu0 %306  ;;  %v1699_v19 = vld [vmem:[%s2778_s1 + $0x28] sm:$0xff]  }
  0xa1   : > { %1594 = vmatprep.subr.bf16.mxu0 %v1699_v19  ;;  %1637 = vmatprep.subr.bf16.mxu1 %v1699_v19 }
  0xa2   : > { %1595 = vmatpush3.bf16.msra.mxu0 %v1699_v19  ;;  %1645 = vmatpush3.bf16.msra.mxu1 %v1699_v19 }
  0xa3   : > { %658 = vperm.xlu0 %1690, %v1804_v8   ;;  %1596 = vmatprep.subr.bf16.mxu0 %v1700_v57 }
  0xa4   : > { %v1964_v44 = vpop.permute.xlu1 %315  ;;  %1683 = vset.pattern.permute.xlu1 %v2780_v33  ;;  %v1967_v45 = vpop.permute.xlu0 %312  ;;  %1638 = vmatprep.subr.bf16.mxu1 %v1700_v57 }
  0xa5   : > { %511 = vperm.xlu1 %1683, %v1857_v21  }
  0xa6   : > { %1597 = vmatpush3.bf16.msra.mxu0 %v1700_v57  ;;  %1646 = vmatpush3.bf16.msra.mxu1 %v1700_v57 }
  0xa7   : > { %706 = vperm.xlu0 %1690, %v1868_v24  }
  0xa8   : > { %v1971_v46 = vpop.permute.xlu1 %321  ;;  %v1973_v47 = vpop.permute.xlu0 %318 }
  0xa9   : > { %2787 = vst [vmem:[#allocation3_spill] sm:$0xff] %v1973_v47  ;;  %514 = vperm.xlu1 %1683, %v1868_v24  }
  0xab   : > { %664 = vperm.xlu0 %1690, %v1812_v10  }
  0xac   : > { %v1977_v48 = vpop.permute.xlu1 %327  ;;  %v1979_v49 = vpop.permute.xlu0 %324 }
  0xad   : > { %2788 = vst [vmem:[#allocation4_spill] sm:$0xff] %v1977_v48  ;;  %1684 = vset.pattern.permute.xlu1 %v2781_v34 }
  0xae   : > { %652 = vperm.xlu1 %1684, %v1796_v6  }
  0xaf   : > { %715 = vperm.xlu0 %1690, %v1873_v25  }
  0xb0   : > { %v1984_v50 = vpop.permute.xlu1 %333  ;;  %v1986_v51 = vpop.permute.xlu0 %330 }
  0xb1   : > { %2789 = vst [vmem:[#allocation5_spill] sm:$0xff] %v1984_v50  ;;  %2790 = vst [vmem:[#allocation6_spill] sm:$0xff] %v1986_v51 }
  0xb2   : > { %700 = vperm.xlu1 %1684, %v1860_v22  }
  0xb3   : > { %673 = vperm.xlu0 %1690, %v1817_v11  }
  0xb4   : > { %v1990_v52 = vpop.permute.xlu1 %339  ;;  %v1992_v53 = vpop.permute.xlu0 %336 }
  0xb6   : > { %703 = vperm.xlu1 %1684, %v1857_v21  }
  0xb7   : > { %721 = vperm.xlu0 %1690, %v1881_v27  }
  0xb8   : > { %v1999_v55 = vpop.permute.xlu1 %345  ;;  %v2001_v56 = vpop.permute.xlu0 %342 }
  0xba   : > { %661 = vperm.xlu1 %1684, %v1801_v7  }
  0xbb   : > { %676 = vperm.xlu0 %1690, %v1828_v14  }
  0xbc   : > { %v2008_v58 = vpop.permute.xlu1 %351  ;;  %v2010_v59 = vpop.permute.xlu0 %348 }
  0xbe   : > { %709 = vperm.xlu1 %1684, %v1865_v23  }
  0xbf   : > { %727 = vperm.xlu0 %1690, %v1889_v29  }
  0xc0   : > { %v2017_v61 = vpop.permute.xlu1 %357  ;;  %v2019_v62 = vpop.permute.xlu0 %354 }
  0xc2   : > { %1685 = vset.pattern.permute.xlu1 %v2784_v35 }
  0xc3   : > { %847 = vperm.xlu1 %1685, %v1793_v5   ;;  %685 = vperm.xlu0 %1690, %v1833_v15  }
  0xc4   : > { %v2027_v2 = vpop.permute.xlu1 %363  ;;  %v2029_v3 = vpop.permute.xlu0 %360 }
  0xc5   : > { %2791 = vst [vmem:[#allocation7_spill] sm:$0xff] %v2029_v3 }
  0xc7   : > { %892 = vperm.xlu1 %1685, %v1860_v22   ;;  %733 = vperm.xlu0 %1690, %v1897_v31  }
  0xc8   : > { %v2036_v18 = vpop.permute.xlu1 %369  ;;  %v2038_v5 = vpop.permute.xlu0 %366 }
  0xc9   : > { %2792 = vst [vmem:[#allocation8_spill] sm:$0xff] %v2036_v18  ;;  %2793 = vst [vmem:[#allocation9_spill] sm:$0xff] %v2038_v5 }
  0xcb   : > { %850 = vperm.xlu1 %1685, %v1804_v8   ;;  %1692 = vset.pattern.permute.xlu0 %v2784_v35 }
  0xcc   : > { %v2045_v54 = vpop.permute.xlu1 %375  ;;  %835 = vperm.xlu0 %1692, %v1788_v4   ;;  %v2048_v22 = vpop.permute.xlu0 %372  ;;  %v1701_v4 = vld [vmem:[%s2778_s1 + $0x38] sm:$0xff]  }
  0xcd   : > { %2794 = vst [vmem:[#allocation10_spill] sm:$0xff] %v2045_v54  ;;  %1598 = vmatprep.subr.bf16.mxu0 %v1701_v4  ;;  %1639 = vmatprep.subr.bf16.mxu1 %v1701_v4  ;;  %v2110_v54 = vand.u32 127, %v285_v0 }
  0xce   : > { %1599 = vmatpush3.bf16.msra.mxu0 %v1701_v4  ;;  %1647 = vmatpush3.bf16.msra.mxu1 %v1701_v4 }
  0xcf   : > { %898 = vperm.xlu1 %1685, %v1868_v24   ;;  %vm401_vm0 = vcmp.eq.s32.totalorder %v2001_v56, %v2110_v54  ;;  %vm403_vm2 = vcmp.eq.s32.totalorder %v2010_v59, %v2110_v54  ;;  %vm411_vm4 = vcmp.eq.s32.totalorder %v2048_v22, %v2110_v54  ;;  %vm399_vm10 = vcmp.eq.s32.totalorder %v1992_v53, %v2110_v54 }
  0xd0   : > { %v2054_v60 = vpop.permute.xlu1 %381  ;;  %838 = vperm.xlu0 %1692, %v1777_v1   ;;  %v2057_v8 = vpop.permute.xlu0 %378  ;;  %vm400_vm13 = vcmp.eq.s32.totalorder %v1990_v52, %v2110_v54 }
  0xd1   : > { %2795 = vst [vmem:[#allocation11_spill] sm:$0xff] %v2054_v60  ;;  %vm413_vm6 = vcmp.eq.s32.totalorder %v2057_v8, %v2110_v54 }
  0xd3   : > { %1686 = vset.pattern.permute.xlu1 %v2780_v33 }
  0xd4   : > { %520 = vperm.xlu1 %1686, %v1876_v26   ;;  %886 = vperm.xlu0 %1692, %v1852_v20  }
  0xd5   : > { %v2065_v24 = vpop.permute.xlu1 %451  ;;  %v2067_v63 = vpop.permute.xlu0 %448 }
  0xd8   : > { %526 = vperm.xlu1 %1686, %v1884_v28   ;;  %844 = vperm.xlu0 %1692, %v1796_v6  }
  0xd9   : > { %v2071_v1 = vpop.permute.xlu1 %454  ;;  %v2073_v17 = vpop.permute.xlu0 %457 }
  0xdc   : > { %529 = vperm.xlu1 %1686, %v1881_v27   ;;  %895 = vperm.xlu0 %1692, %v1857_v21  }
  0xdd   : > { %v2077_v20 = vpop.permute.xlu1 %460  ;;  %v2079_v19 = vpop.permute.xlu0 %463 }
  0xe0   : > { %1687 = vset.pattern.permute.xlu1 %v2781_v34  ;;  %853 = vperm.xlu0 %1692, %v1801_v7  }
  0xe1   : > { %v2083_v57 = vpop.permute.xlu1 %466  ;;  %667 = vperm.xlu1 %1687, %v1809_v9   ;;  %v2086_v6 = vpop.permute.xlu0 %469 }
  0xe4   : > { %901 = vperm.xlu0 %1692, %v1865_v23  }
  0xe5   : > { %v2089_v4 = vpop.permute.xlu1 %472  ;;  %712 = vperm.xlu1 %1687, %v1876_v26   ;;  %v2092_v21 = vpop.permute.xlu0 %475 }
  0xe8   : > { %859 = vperm.xlu0 %1692, %v1809_v9   ;;  %v2799_v9 = vmov 3  }
  0xe9   : > { %v2095_v33 = vpop.permute.xlu1 %478  ;;  %670 = vperm.xlu1 %1687, %v1820_v12   ;;  %v2098_v7 = vpop.permute.xlu0 %481 }
  0xea   : > { %2796 = vst [vmem:[#allocation12_spill] sm:$0xff] %v2095_v33 }
  0xec   : > { %862 = vperm.xlu0 %1692, %v1820_v12  }
  0xed   : > { %v2101_v34 = vpop.permute.xlu1 %484  ;;  %718 = vperm.xlu1 %1687, %v1884_v28   ;;  %v2104_v23 = vpop.permute.xlu0 %487 }
  0xee   : > { %2797 = vst [vmem:[#allocation13_spill] sm:$0xff] %v2104_v23 }
  0xf0   : > { %910 = vperm.xlu0 %1692, %v1884_v28   ;;  %v2800_v28 = vmov 0  }
  0xf1   : > { %v2107_v35 = vpop.permute.xlu1 %490  ;;  %1688 = vset.pattern.permute.xlu1 %v2799_v9  ;;  %v497_v60 = vpop.permute.xlu0 %496 }
  0xf2   : > { %2798 = vst [vmem:[#allocation14_spill] sm:$0xff] %v2107_v35  ;;  %856 = vperm.xlu1 %1688, %v1812_v10   ;;  %v433_v35 = vsel %vm401_vm0, 1, %v2800_v28  ;;  %vm559_vm9 = vcmp.eq.s32.totalorder %v497_v60, %v2110_v54  ;;  %v431_v60 = vsel %vm399_vm10, 1, %v2800_v28 }
  0xf4   : > { %871 = vperm.xlu0 %1692, %v1825_v13  }
  0xf5   : > { %v500_v12 = vpop.permute.xlu1 %499  ;;  %v503_v51 = vpop.permute.xlu0 %502 }
  0xf6   : > { %vm561_vm1 = vcmp.eq.s32.totalorder %v503_v51, %v2110_v54  ;;  %904 = vperm.xlu1 %1688, %v1876_v26   ;;  %v435_v51 = vsel %vm403_vm2, 1, %v2800_v28  ;;  %vm560_vm11 = vcmp.eq.s32.totalorder %v500_v12, %v2110_v54  ;;  %vm408_vm2 = vcmp.eq.s32.totalorder %v2027_v2, %v2110_v54 }
  0xf7   : > { %v593_v50 = vsel %vm561_vm1, 1, %v2800_v28 }
  0xf8   : > { %v625_v0 = vadd.s32 %v593_v50, %v433_v35  ;;  %874 = vperm.xlu0 %1692, %v1836_v16  }
  0xf9   : > { %v2123_v10 = vpop.permute.xlu1 %505  ;;  %v509_v56 = vpop.permute.xlu0 %508 }
  0xfa   : > { %vm563_vm3 = vcmp.eq.s32.totalorder %v509_v56, %v2110_v54  ;;  %907 = vperm.xlu1 %1688, %v1873_v25  }
  0xfb   : > { %v595_v26 = vsel %vm563_vm3, 1, %v2800_v28  ;;  %vm554_vm3 = vcmp.eq.s32.totalorder %v2098_v7, %v2110_v54 }
  0xfc   : > { %v2129_v48 = vadd.s32 %v595_v26, %v435_v51  ;;  %922 = vperm.xlu0 %1692, %v1900_v32   ;;  %v2801_v51 = vmov 1   ;;  %v443_v26 = vsel %vm411_vm4, 1, %v2800_v28  ;;  %vm394_vm4 = vcmp.eq.s32.totalorder %v1971_v46, %v2110_v54 }
  0xfd   : > { %v2132_v23 = vpop.permute.xlu0 %517  ;;  %v586_v2 = vsel %vm554_vm3, 1, %v2800_v28  ;;  %v426_v7 = vsel %vm394_vm4, 1, %v2800_v28  ;;  %vm389_vm3 = vcmp.eq.s32.totalorder %v1961_v43, %v2110_v54  ;;  %vm544_vm4 = vcmp.eq.s32.totalorder %v2065_v24, %v2110_v54 }
  0xfe   : > { %v2134_v35 = vpop.permute.xlu1 %643  ;;  %865 = vperm.xlu1 %1688, %v1817_v11  }
 0x101   : > { %v2137_v50 = vpop.permute.xlu0 %523 }
 0x102   : > { %v689_v59 = vpop.permute.xlu1 %688  ;;  %913 = vperm.xlu1 %1688, %v1881_v27   ;;  %vm568_vm1 = vcmp.eq.s32.totalorder %v2137_v50, %v2110_v54 }
 0x103   : > { %vm751_vm12 = vcmp.eq.s32.totalorder %v689_v59, %v2110_v54  ;;  %v432_v59 = vsel %vm400_vm13, 1, %v2800_v28  ;;  %vm384_vm13 = vcmp.eq.s32.totalorder %v1949_v39, %v2110_v54 }
 0x105   : > { %v533_v25 = vpop.permute.xlu0 %532 }
 0x106   : > { %vm571_vm5 = vcmp.eq.s32.totalorder %v533_v25, %v2110_v54  ;;  %v2143_v56 = vpop.permute.xlu1 %646  ;;  %1689 = vset.pattern.permute.xlu1 %v2801_v51  ;;  %v445_v25 = vsel %vm413_vm6, 1, %v2800_v28 }
 0x107   : > { %v603_v18 = vsel %vm571_vm5, 1, %v2800_v28  ;;  %535 = vperm.xlu1 %1689, %v1889_v29  }
 0x108   : > { %v2151_v11 = vadd.s32 %v603_v18, %v443_v26  ;;  %v783_v26 = vsel %vm751_vm12, 1, %v2800_v28  ;;  %vm386_vm12 = vcmp.eq.s32.totalorder %v1946_v38, %v2110_v54 }
 0x109   : > { %v539_v27 = vpop.permute.xlu0 %538 }
 0x10a   : > { %2802 = vst [vmem:[#allocation15_spill] sm:$0xff] %v2151_v11  ;;  %vm573_vm7 = vcmp.eq.s32.totalorder %v539_v27, %v2110_v54  ;;  %v695_v22 = vpop.permute.xlu1 %694  ;;  %v2804_v27 = vmov 2  }
 0x10b   : > { %v605_v5 = vsel %vm573_vm7, 1, %v2800_v28  ;;  %vm753_vm8 = vcmp.eq.s32.totalorder %v695_v22, %v2110_v54  ;;  %493 = vperm.xlu1 %1689, %v1833_v15   ;;  %vm555_vm7 = vcmp.eq.s32.totalorder %v2101_v34, %v2110_v54 }
 0x10c   : > { %v2158_v51 = vadd.s32 %v605_v5, %v445_v25  ;;  %v785_v33 = vsel %vm753_vm8, 1, %v2800_v28  ;;  %v591_v5 = vsel %vm559_vm9, 1, %v2800_v28  ;;  %vm395_vm8 = vcmp.eq.s32.totalorder %v1979_v49, %v2110_v54 }
 0x10d   : > { %v2161_v3 = vadd.s32 %v785_v33, %v625_v0  ;;  %v592_v0 = vsel %vm560_vm11, 1, %v2800_v28  ;;  %v623_v12 = vadd.s32 %v591_v5, %v431_v60  ;;  %vm385_vm9 = vcmp.eq.s32.totalorder %v1940_v36, %v2110_v54 }
 0x10e   : > { %2803 = vst [vmem:[#allocation16_spill] sm:$0xff] %v2158_v51  ;;  %v2164_v18 = vpop.permute.xlu0 %640  ;;  %v624_v25 = vadd.s32 %v592_v0, %v432_v59  ;;  %vm383_vm11 = vcmp.eq.s32.totalorder %v1943_v37, %v2110_v54  ;;  %v416_v36 = vsel %vm384_vm13, 1, %v2800_v28  ;;  %vm736_vm13 = vcmp.eq.s32.totalorder %v2134_v35, %v2110_v54 }
 0x10f   : > { %541 = vperm.xlu1 %1689, %v1897_v31   ;;  %v2167_v8 = vpop.permute.xlu1 %832  ;;  %v815_v51 = vadd.s32 %v783_v26, %v623_v12 }
 0x112   : > { %v692_v33 = vpop.permute.xlu0 %691 }
 0x113   : > { %vm752_vm14 = vcmp.eq.s32.totalorder %v692_v33, %v2110_v54  ;;  %1691 = vset.pattern.permute.xlu1 %v2804_v27  ;;  %v881_v53 = vpop.permute.xlu1 %880 }
 0x114   : > { %vm943_vm15 = vcmp.eq.s32.totalorder %v881_v53, %v2110_v54  ;;  %679 = vperm.xlu1 %1691, %v1825_v13   ;;  %v784_v52 = vsel %vm752_vm14, 1, %v2800_v28  ;;  %vm388_vm14 = vcmp.eq.s32.totalorder %v1952_v40, %v2110_v54  ;;  %v2349_v40 = vsel %vm389_vm3, 1, %v2800_v28 }
 0x115   : > { %v975_v22 = vsel %vm943_vm15, 1, %v2800_v28  ;;  %v816_v33 = vadd.s32 %v784_v52, %v624_v25  ;;  %vm186_vm15 = vcmask 261120   ;;  %v420_v37 = vsel %vm388_vm14, 1, %v2800_v28 }
 0x116   : > { %v2186_v11 = vpop.permute.xlu0 %649  ;;  %v1007_v5 = vadd.s32 %v975_v22, %v815_v51  ;;  %vm927_vm14 = vcmp.eq.s32.totalorder %v2167_v8, %v2110_v54 }
 0x117   : > { %v884_v47 = vpop.permute.xlu1 %883 }
 0x118   : > { %vm944_vm0 = vcmp.eq.s32.totalorder %v884_v47, %v2110_v54  ;;  %724 = vperm.xlu1 %1691, %v1892_v30   ;;  %v1039_v0 = vcvt.s32.f32 %v1007_v5 }
 0x119   : > { %v976_v60 = vsel %vm944_vm0, 1, %v2800_v28  ;;  %vm387_vm0 = vcmp.eq.s32.totalorder %v1955_v41, %v2110_v54 }
 0x11a   : > { %v2191_v13 = vpop.permute.xlu0 %697  ;;  %v1008_v27 = vadd.s32 %v976_v60, %v816_v33 }
 0x11b   : > { %v2193_v53 = vpop.permute.xlu1 %841  ;;  %vm754_vm3 = vcmp.eq.s32.totalorder %v2191_v13, %v2110_v54 }
 0x11c   : > { %682 = vperm.xlu1 %1691, %v1836_v16   ;;  %v1040_v26 = vcvt.s32.f32 %v1008_v27  ;;  %v618_v27 = vadd.s32 %v586_v2, %v426_v7  ;;  %v417_v7 = vsel %vm385_vm9, 1, %v2800_v28  ;;  %vm404_vm9 = vcmp.eq.s32.totalorder %v2008_v58, %v2110_v54 }
 0x11e   : > { %v2196_v12 = vpop.permute.xlu0 %655  ;;  %v1063_v59 = vpack.c.bf16 %v1040_v26, %v1039_v0 }
 0x11f   : > { %v2198_v52 = vpop.permute.xlu1 %889 }
 0x120   : > { %730 = vperm.xlu1 %1691, %v1900_v32   ;;  %1616 = vmatprep.mubr.bf16.mxu1 %v1063_v59  ;;  %v600_v32 = vsel %vm568_vm1, 1, %v2800_v28  ;;  %v587_v59 = vsel %vm555_vm7, 1, %v2800_v28  ;;  %vm543_vm1 = vcmp.eq.s32.totalorder %v2067_v63, %v2110_v54  ;;  %vm545_vm7 = vcmp.eq.s32.totalorder %v2071_v1, %v2110_v54 }
 0x121   : > { %v575_v38 = vsel %vm543_vm1, 1, %v2800_v28  ;;  %vm738_vm1 = vcmp.eq.s32.totalorder %v2186_v11, %v2110_v54 }
 0x122   : > { %v2201_v47 = vpop.permute.xlu0 %658 }
 0x124   : > { %1693 = vset.pattern.permute.xlu1 %v2799_v9  ;;  %v2204_v51 = vpop.permute.xlu1 %511  ;;  %v440_v9 = vsel %vm408_vm2, 1, %v2800_v28  ;;  %vm390_vm2 = vcmp.eq.s32.totalorder %v1958_v42, %v2110_v54  ;;  %v419_v42 = vsel %vm387_vm0, 1, %v2800_v28  ;;  %vm562_vm0 = vcmp.eq.s32.totalorder %v2123_v10, %v2110_v54 }
 0x125   : > { %868 = vperm.xlu1 %1693, %v1828_v14   ;;  %v2346_v39 = vsel %vm390_vm2, 1, %v2800_v28  ;;  %vm737_vm2 = vcmp.eq.s32.totalorder %v2143_v56, %v2110_v54  ;;  %v594_v11 = vsel %vm562_vm0, 1, %v2800_v28  ;;  %vm564_vm0 = vcmp.eq.s32.totalorder %v2204_v51, %v2110_v54 }
 0x126   : > { %v2207_v22 = vpop.permute.xlu0 %706 }
 0x128   : > { %v2209_v16 = vpop.permute.xlu1 %514 }
 0x129   : > { %916 = vperm.xlu1 %1693, %v1892_v30   ;;  %v632_v30 = vadd.s32 %v600_v32, %v440_v9  ;;  %v427_v9 = vsel %vm395_vm8, 1, %v2800_v28  ;;  %vm546_vm8 = vcmp.eq.s32.totalorder %v2073_v17, %v2110_v54  ;;  %v577_v17 = vsel %vm545_vm7, 1, %v2800_v28 }
 0x12a   : > { %v2214_v25 = vpop.permute.xlu0 %664  ;;  %v619_v34 = vadd.s32 %v587_v59, %v427_v9  ;;  %v578_v58 = vsel %vm546_vm8, 1, %v2800_v28  ;;  %v609_v8 = vadd.s32 %v577_v17, %v417_v7  ;;  %v770_v7 = vsel %vm738_vm1, 1, %v2800_v28 }
 0x12b   : > { %vm946_vm7 = vcmp.eq.s32.totalorder %v2198_v52, %v2110_v54  ;;  %vm406_vm1 = vcmp.eq.s32.totalorder %v2017_v61, %v2110_v54 }
 0x12d   : > { %919 = vperm.xlu1 %1693, %v1889_v29   ;;  %v2222_v14 = vpop.permute.xlu1 %652 }
 0x12e   : > { %v716_v33 = vpop.permute.xlu0 %715 }
 0x12f   : > { %vm760_vm5 = vcmp.eq.s32.totalorder %v716_v33, %v2110_v54 }
 0x130   : > { %v792_v50 = vsel %vm760_vm5, 1, %v2800_v28  ;;  %vm402_vm5 = vcmp.eq.s32.totalorder %v1999_v55, %v2110_v54  ;;  %v576_v55 = vsel %vm544_vm4, 1, %v2800_v28  ;;  %vm930_vm4 = vcmp.eq.s32.totalorder %v2193_v53, %v2110_v54 }
 0x131   : > { %v2230_v5 = vadd.s32 %v792_v50, %v632_v30  ;;  %877 = vperm.xlu1 %1693, %v1833_v15   ;;  %v2233_v29 = vpop.permute.xlu1 %700  ;;  %v1730_v50 = vmov 0.0   ;;  %v434_v24 = vsel %vm402_vm5, 1, %v2800_v28  ;;  %vm549_vm5 = vcmp.eq.s32.totalorder %v2083_v57, %v2110_v54 }
 0x132   : > { %v674_v60 = vpop.permute.xlu0 %673  ;;  %189 = vst.msk [vmem:[#allocation2 + $0x10] sm:$0xff] %vm186_vm15, %v1730_v50  ;;  %187 = vst.msk [vmem:[#allocation2] sm:$0xff] %vm186_vm15, %v1730_v50  ;;  %v769_v53 = vsel %vm737_vm2, 1, %v2800_v28  ;;  %v581_v52 = vsel %vm549_vm5, 1, %v2800_v28  ;;  %vm755_vm2 = vcmp.eq.s32.totalorder %v2233_v29, %v2110_v54 }
 0x133   : > { %vm746_vm6 = vcmp.eq.s32.totalorder %v674_v60, %v2110_v54  ;;  %188 = vst.msk [vmem:[#allocation2 + $0x8] sm:$0xff] %vm186_vm15, %v1730_v50  ;;  %190 = vst.msk [vmem:[#allocation2 + $0x18] sm:$0xff] %vm186_vm15, %v1730_v50  ;;  %v415_v60 = vsel %vm383_vm11, 1, %v2800_v28  ;;  %vm547_vm11 = vcmp.eq.s32.totalorder %v2077_v20, %v2110_v54 }
 0x134   : > { %v778_v46 = vsel %vm746_vm6, 1, %v2800_v28  ;;  %191 = vst.msk [vmem:[#allocation2 + $0x20] sm:$0xff] %vm186_vm15, %v1730_v50  ;;  %192 = vst.msk [vmem:[#allocation2 + $0x28] sm:$0xff] %vm186_vm15, %v1730_v50  ;;  %vm735_vm6 = vcmp.eq.s32.totalorder %v2164_v18, %v2110_v54  ;;  %v607_v63 = vadd.s32 %v575_v38, %v415_v60  ;;  %v608_v18 = vadd.s32 %v576_v55, %v416_v36 }
 0x135   : > { %v2240_v0 = vadd.s32 %v778_v46, %v618_v27  ;;  %925 = vperm.xlu1 %1693, %v1897_v31   ;;  %v2243_v26 = vpop.permute.xlu1 %703  ;;  %193 = vst.msk [vmem:[#allocation2 + $0x30] sm:$0xff] %vm186_vm15, %v1730_v50  ;;  %194 = vst.msk [vmem:[#allocation2 + $0x38] sm:$0xff] %vm186_vm15, %v1730_v50  ;;  %v418_v27 = vsel %vm386_vm12, 1, %v2800_v28  ;;  %vm548_vm12 = vcmp.eq.s32.totalorder %v2079_v19, %v2110_v54  ;;  %v767_v1 = vsel %vm735_vm6, 1, %v2800_v28 }
 0x136   : > { %v2245_v15 = vpop.permute.xlu0 %721  ;;  %195 = vst.msk [vmem:[#allocation2 + $0x40] sm:$0xff] %vm186_vm15, %v1730_v50  ;;  %196 = vst.msk [vmem:[#allocation2 + $0x48] sm:$0xff] %vm186_vm15, %v1730_v50  ;;  %v579_v19 = vsel %vm547_vm11, 1, %v2800_v28  ;;  %v580_v9 = vsel %vm548_vm12, 1, %v2800_v28  ;;  %v799_v35 = vadd.s32 %v767_v1, %v607_v63  ;;  %vm550_vm6 = vcmp.eq.s32.totalorder %v2086_v6, %v2110_v54 }
 0x137   : > { %197 = vst.msk [vmem:[#allocation2 + $0x50] sm:$0xff] %vm186_vm15, %v1730_v50  ;;  %198 = vst.msk [vmem:[#allocation2 + $0x58] sm:$0xff] %vm186_vm15, %v1730_v50  ;;  %v612_v10 = vadd.s32 %v580_v9, %v420_v37  ;;  %v786_v36 = vsel %vm754_vm3, 1, %v2800_v28  ;;  %v962_v37 = vsel %vm930_vm4, 1, %v2800_v28  ;;  %v582_v55 = vsel %vm550_vm6, 1, %v2800_v28 }
 0x138   : > { %199 = vst.msk [vmem:[#allocation2 + $0x60] sm:$0xff] %vm186_vm15, %v1730_v50  ;;  %200 = vst.msk [vmem:[#allocation2 + $0x68] sm:$0xff] %vm186_vm15, %v1730_v50  ;;  %v978_v63 = vsel %vm946_vm7, 1, %v2800_v28  ;;  %vm566_vm12 = vcmp.eq.s32.totalorder %v2132_v23, %v2110_v54  ;;  %vm756_vm3 = vcmp.eq.s32.totalorder %v2243_v26, %v2110_v54  ;;  %vm565_vm6 = vcmp.eq.s32.totalorder %v2209_v16, %v2110_v54 }
 0x139   : > { %v2250_v32 = vpop.permute.xlu1 %661  ;;  %201 = vst.msk [vmem:[#allocation2 + $0x70] sm:$0xff] %vm186_vm15, %v1730_v50  ;;  %202 = vst.msk [vmem:[#allocation2 + $0x78] sm:$0xff] %vm186_vm15, %v1730_v50  ;;  %v598_v16 = vsel %vm566_vm12, 1, %v2800_v28  ;;  %v438_v23 = vsel %vm406_vm1, 1, %v2800_v28  ;;  %vm552_vm1 = vcmp.eq.s32.totalorder %v2092_v21, %v2110_v54 }
 0x13a   : > { %v677_v33 = vpop.permute.xlu0 %676  ;;  %203 = vst.msk [vmem:[#allocation2 + $0x80] sm:$0xff] %vm186_vm15, %v1730_v50  ;;  %204 = vst.msk [vmem:[#allocation2 + $0x88] sm:$0xff] %vm186_vm15, %v1730_v50  ;;  %vm742_vm7 = vcmp.eq.s32.totalorder %v2250_v32, %v2110_v54 }
 0x13b   : > { %vm747_vm10 = vcmp.eq.s32.totalorder %v677_v33, %v2110_v54  ;;  %205 = vst.msk [vmem:[#allocation2 + $0x90] sm:$0xff] %vm186_vm15, %v1730_v50  ;;  %206 = vst.msk [vmem:[#allocation2 + $0x98] sm:$0xff] %vm186_vm15, %v1730_v50  ;;  %v610_v33 = vadd.s32 %v578_v58, %v418_v27  ;;  %v801_v58 = vadd.s32 %v769_v53, %v609_v8  ;;  %v596_v53 = vsel %vm564_vm0, 1, %v2800_v28 }
 0x13c   : > { %v779_v31 = vsel %vm747_vm10, 1, %v2800_v28  ;;  %207 = vst.msk [vmem:[#allocation2 + $0xa0] sm:$0xff] %vm186_vm15, %v1730_v50  ;;  %208 = vst.msk [vmem:[#allocation2 + $0xa8] sm:$0xff] %vm186_vm15, %v1730_v50  ;;  %vm405_vm10 = vcmp.eq.s32.totalorder %v2019_v62, %v2110_v54  ;;  %v2377_v62 = vsel %vm404_vm9, 1, %v2800_v28  ;;  %vm740_vm9 = vcmp.eq.s32.totalorder %v2196_v12, %v2110_v54 }
 0x13d   : > { %v2265_v49 = vadd.s32 %v779_v31, %v619_v34  ;;  %v2267_v30 = vpop.permute.xlu1 %709  ;;  %209 = vst.msk [vmem:[#allocation2 + $0xb0] sm:$0xff] %vm186_vm15, %v1730_v50  ;;  %210 = vst.msk [vmem:[#allocation2 + $0xb8] sm:$0xff] %vm186_vm15, %v1730_v50  ;;  %v2380_v20 = vsel %vm405_vm10, 1, %v2800_v28  ;;  %v768_v34 = vsel %vm736_vm13, 1, %v2800_v28  ;;  %v959_v31 = vsel %vm927_vm14, 1, %v2800_v28 }
 0x13e   : > { %v2273_v2 = vpop.permute.xlu0 %727  ;;  %211 = vst.msk [vmem:[#allocation2 + $0xc0] sm:$0xff] %vm186_vm15, %v1730_v50  ;;  %212 = vst.msk [vmem:[#allocation2 + $0xc8] sm:$0xff] %vm186_vm15, %v1730_v50  ;;  %v800_v56 = vadd.s32 %v768_v34, %v608_v18  ;;  %v991_v27 = vadd.s32 %v959_v31, %v799_v35  ;;  %v802_v38 = vadd.s32 %v770_v7, %v610_v33  ;;  %v772_v12 = vsel %vm740_vm9, 1, %v2800_v28 }
 0x13f   : > { %213 = vst.msk [vmem:[#allocation2 + $0xd0] sm:$0xff] %vm186_vm15, %v1730_v50  ;;  %214 = vst.msk [vmem:[#allocation2 + $0xd8] sm:$0xff] %vm186_vm15, %v1730_v50  ;;  %vm739_vm10 = vcmp.eq.s32.totalorder %v2222_v14, %v2110_v54  ;;  %v613_v35 = vadd.s32 %v581_v52, %v2349_v40  ;;  %v2433_v33 = vadd.s32 %v582_v55, %v2346_v39 }
 0x140   : > { %215 = vst.msk [vmem:[#allocation2 + $0xe0] sm:$0xff] %vm186_vm15, %v1730_v50  ;;  %216 = vst.msk [vmem:[#allocation2 + $0xe8] sm:$0xff] %vm186_vm15, %v1730_v50  ;;  %v994_v18 = vadd.s32 %v962_v37, %v802_v38  ;;  %v1023_v9 = vcvt.s32.f32 %v991_v27  ;;  %vm741_vm13 = vcmp.eq.s32.totalorder %v2201_v47, %v2110_v54  ;;  %v804_v7 = vadd.s32 %v772_v12, %v612_v10 }
 0x141   : > { %217 = vst.msk [vmem:[#allocation2 + $0xf0] sm:$0xff] %vm186_vm15, %v1730_v50  ;;  %218 = vst.msk [vmem:[#allocation2 + $0xf8] sm:$0xff] %vm186_vm15, %v1730_v50  ;;  %v2394_v50 = vadd.s32 %v579_v19, %v419_v42  ;;  %v626_v42 = vadd.s32 %v594_v11, %v434_v24  ;;  %v771_v39 = vsel %vm739_vm10, 1, %v2800_v28  ;;  %v773_v51 = vsel %vm741_vm13, 1, %v2800_v28 }
 0x142   : > { %v2355_v41 = vpop.permute.xlu1 %847  ;;  %v2357_v43 = vpop.permute.xlu0 %685  ;;  %v1026_v11 = vcvt.s32.f32 %v994_v18  ;;  %v787_v37 = vsel %vm755_vm2, 1, %v2800_v28  ;;  %vm757_vm9 = vcmp.eq.s32.totalorder %v2207_v22, %v2110_v54  ;;  %v805_v12 = vadd.s32 %v773_v51, %v613_v35 }
 0x143   : > { %v818_v24 = vadd.s32 %v786_v36, %v626_v42  ;;  %vm932_vm14 = vcmp.eq.s32.totalorder %v2355_v41, %v2110_v54  ;;  %v803_v47 = vadd.s32 %v771_v39, %v2394_v50  ;;  %v788_v41 = vsel %vm756_vm3, 1, %v2800_v28 }
 0x144   : > { %v964_v27 = vsel %vm932_vm14, 1, %v2800_v28  ;;  %vm551_vm2 = vcmp.eq.s32.totalorder %v2089_v4, %v2110_v54  ;;  %vm392_vm3 = vcmp.eq.s32.totalorder %v1964_v44, %v2110_v54 }
 0x145   : > { %v1010_v34 = vadd.s32 %v978_v63, %v818_v24  ;;  %v819_v63 = vadd.s32 %v787_v37, %v2129_v48  ;;  %v774_v24 = vsel %vm742_vm7, 1, %v2800_v28  ;;  %v583_v21 = vsel %vm551_vm2, 1, %v2800_v28 }
 0x146   : > { %v2383_v46 = vpop.permute.xlu1 %892  ;;  %v2385_v59 = vpop.permute.xlu0 %733  ;;  %v806_v35 = vadd.s32 %v774_v24, %v2433_v33  ;;  %v2805_v24 = vld [vmem:[#allocation3_spill] sm:$0xff] }
 0x147   : > { %v1042_v10 = vcvt.s32.f32 %v1010_v34  ;;  %vm947_vm5 = vcmp.eq.s32.totalorder %v2383_v46, %v2110_v54 }
 0x148   : > { %v979_v50 = vsel %vm947_vm5, 1, %v2800_v28  ;;  %vm391_vm5 = vcmp.eq.s32.totalorder %v1967_v45, %v2110_v54 }
 0x14a   : > { %v2406_v60 = vpop.permute.xlu1 %850 }
 0x14b   : > { %v836_v13 = vpop.permute.xlu0 %835  ;;  %vm933_vm10 = vcmp.eq.s32.totalorder %v2406_v60, %v2110_v54  ;;  %v789_v60 = vsel %vm757_vm9, 1, %v2800_v28  ;;  %vm393_vm9 = vcmp.eq.s32.totalorder %v2805_v24, %v2110_v54 }
 0x14c   : > { %vm928_vm8 = vcmp.eq.s32.totalorder %v836_v13, %v2110_v54 }
 0x14d   : > { %v960_v6 = vsel %vm928_vm8, 1, %v2800_v28 }
 0x14e   : > { %v2425_v1 = vpop.permute.xlu1 %898  ;;  %v992_v17 = vadd.s32 %v960_v6, %v800_v56  ;;  %v996_v6 = vadd.s32 %v964_v27, %v804_v7 }
 0x14f   : > { %v839_v19 = vpop.permute.xlu0 %838  ;;  %vm949_vm14 = vcmp.eq.s32.totalorder %v2425_v1, %v2110_v54 }
 0x150   : > { %vm929_vm11 = vcmp.eq.s32.totalorder %v839_v19, %v2110_v54  ;;  %v1024_v57 = vcvt.s32.f32 %v992_v17  ;;  %v1028_v48 = vcvt.s32.f32 %v996_v6  ;;  %v1011_v19 = vadd.s32 %v979_v50, %v819_v63 }
 0x151   : > { %v961_v8 = vsel %vm929_vm11, 1, %v2800_v28  ;;  %vm758_vm11 = vcmp.eq.s32.totalorder %v2267_v30, %v2110_v54  ;;  %v424_v63 = vsel %vm392_vm3, 1, %v2800_v28 }
 0x152   : > { %v993_v14 = vadd.s32 %v961_v8, %v801_v58  ;;  %v1055_v31 = vpack.c.bf16 %v1024_v57, %v1023_v9  ;;  %v965_v57 = vsel %vm933_vm10, 1, %v2800_v28 }
 0x153   : > { %v2445_v40 = vpop.permute.xlu1 %520  ;;  %v887_v56 = vpop.permute.xlu0 %886  ;;  %v997_v7 = vadd.s32 %v965_v57, %v805_v12 }
 0x154   : > { %v1025_v13 = vcvt.s32.f32 %v993_v14  ;;  %vm945_vm4 = vcmp.eq.s32.totalorder %v887_v56, %v2110_v54  ;;  %1600 = vmatprep.mubr.bf16.mxu0 %v1055_v31  ;;  %v630_v56 = vadd.s32 %v598_v16, %v438_v23 }
 0x155   : > { %v977_v29 = vsel %vm945_vm4, 1, %v2800_v28  ;;  %v1029_v30 = vcvt.s32.f32 %v997_v7 }
 0x156   : > { %v1009_v26 = vadd.s32 %v977_v29, %v2161_v3  ;;  %v1056_v36 = vpack.c.bf16 %v1026_v11, %v1025_v13  ;;  %v628_v3 = vadd.s32 %v596_v53, %v2377_v62  ;;  %v597_v62 = vsel %vm565_vm6, 1, %v2800_v28 }
 0x157   : > { %v2472_v42 = vpop.permute.xlu1 %526  ;;  %v845_v38 = vpop.permute.xlu0 %844  ;;  %v629_v8 = vadd.s32 %v597_v62, %v2380_v20  ;;  %v790_v20 = vsel %vm758_vm11, 1, %v2800_v28  ;;  %v1043_v11 = vcvt.s32.f32 %v1011_v19  ;;  %v981_v13 = vsel %vm949_vm14, 1, %v2800_v28 }
 0x158   : > { %v1041_v52 = vcvt.s32.f32 %v1009_v26  ;;  %vm931_vm8 = vcmp.eq.s32.totalorder %v845_v38, %v2110_v54  ;;  %1601 = vmatmul.mubr.bf16.vlgmr.msra.gmra.mrb[0].mxu0 %v1056_v36  ;;  %v820_v58 = vadd.s32 %v788_v41, %v628_v3  ;;  %v822_v27 = vadd.s32 %v790_v20, %v630_v56 }
 0x159   : > { %v963_v55 = vsel %vm931_vm8, 1, %v2800_v28  ;;  %vm743_vm6 = vcmp.eq.s32.totalorder %v2214_v25, %v2110_v54  ;;  %vm567_vm8 = vcmp.eq.s32.totalorder %v2445_v40, %v2110_v54 }
 0x15a   : > { %v995_v32 = vadd.s32 %v963_v55, %v803_v47  ;;  %v1064_v17 = vpack.c.bf16 %v1042_v10, %v1041_v52  ;;  %v821_v10 = vadd.s32 %v789_v60, %v629_v8  ;;  %v584_v55 = vsel %vm552_vm1, 1, %v2800_v28 }
 0x15b   : > { %v2495_v46 = vpop.permute.xlu1 %529  ;;  %v896_v18 = vpop.permute.xlu0 %895  ;;  %v775_v45 = vsel %vm743_vm6, 1, %v2800_v28  ;;  %v599_v16 = vsel %vm567_vm8, 1, %v2800_v28 }
 0x15c   : > { %v1027_v9 = vcvt.s32.f32 %v995_v32  ;;  %vm948_vm13 = vcmp.eq.s32.totalorder %v896_v18, %v2110_v54  ;;  %1617 = vmatmul.mubr.bf16.vlgmr.msra.gmra.mrb[0].mxu1 %v1064_v17  ;;  %v1013_v53 = vadd.s32 %v981_v13, %v821_v10  ;;  %v423_v32 = vsel %vm391_vm5, 1, %v2800_v28  ;;  %v2806_v18 = vld [vmem:[#allocation7_spill] sm:$0xff] }
 0x15d   : > { %v980_v34 = vsel %vm948_vm13, 1, %v2800_v28  ;;  %v616_v17 = vadd.s32 %v584_v55, %v424_v63  ;;  %v615_v62 = vadd.s32 %v583_v21, %v423_v32  ;;  %vm407_vm10 = vcmp.eq.s32.totalorder %v2806_v18, %v2110_v54 }
 0x15e   : > { %v1012_v14 = vadd.s32 %v980_v34, %v820_v58  ;;  %v1057_v31 = vpack.c.bf16 %v1028_v48, %v1027_v9  ;;  %v1045_v38 = vcvt.s32.f32 %v1013_v53  ;;  %v2807_v48 = vld [vmem:[#allocation12_spill] sm:$0xff]  ;;  %v439_v34 = vsel %vm407_vm10, 1, %v2800_v28 }
 0x15f   : > { %v854_v1 = vpop.permute.xlu0 %853  ;;  %vm553_vm11 = vcmp.eq.s32.totalorder %v2807_v48, %v2110_v54  ;;  %v807_v19 = vadd.s32 %v775_v45, %v615_v62  ;;  %v631_v23 = vadd.s32 %v599_v16, %v439_v34  ;;  %vm570_vm2 = vcmp.eq.s32.totalorder %v2495_v46, %v2110_v54 }
 0x160   : > { %v1044_v39 = vcvt.s32.f32 %v1012_v14  ;;  %vm934_vm12 = vcmp.eq.s32.totalorder %v854_v1, %v2110_v54  ;;  %v668_v61 = vpop.permute.xlu1 %667  ;;  %1604 = vmatprep.mubr.bf16.mxu0 %v1057_v31  ;;  %v585_v8 = vsel %vm553_vm11, 1, %v2800_v28  ;;  %v425_v31 = vsel %vm393_vm9, 1, %v2800_v28 }
 0x161   : > { %v966_v22 = vsel %vm934_vm12, 1, %v2800_v28  ;;  %vm744_vm4 = vcmp.eq.s32.totalorder %v668_v61, %v2110_v54  ;;  %v617_v7 = vadd.s32 %v585_v8, %v425_v31  ;;  %v2808_v61 = vld [vmem:[#allocation9_spill] sm:$0xff]  ;;  %vm762_vm9 = vcmp.eq.s32.totalorder %v2245_v15, %v2110_v54 }
 0x162   : > { %v998_v33 = vadd.s32 %v966_v22, %v806_v35  ;;  %v1065_v51 = vpack.c.bf16 %v1044_v39, %v1043_v11  ;;  %v776_v44 = vsel %vm744_vm4, 1, %v2800_v28  ;;  %vm409_vm4 = vcmp.eq.s32.totalorder %v2808_v61, %v2110_v54  ;;  %v2809_v22 = vld [vmem:[#allocation8_spill] sm:$0xff] }
 0x163   : > { %v902_v29 = vpop.permute.xlu0 %901  ;;  %v808_v58 = vadd.s32 %v776_v44, %v616_v17  ;;  %vm410_vm6 = vcmp.eq.s32.totalorder %v2809_v22, %v2110_v54  ;;  %v441_v53 = vsel %vm409_vm4, 1, %v2800_v28 }
 0x164   : > { %v1030_v26 = vcvt.s32.f32 %v998_v33  ;;  %vm950_vm0 = vcmp.eq.s32.totalorder %v902_v29, %v2110_v54  ;;  %v713_v36 = vpop.permute.xlu1 %712  ;;  %1620 = vmatprep.mubr.bf16.mxu1 %v1065_v51 }
 0x165   : > { %v982_v47 = vsel %vm950_vm0, 1, %v2800_v28  ;;  %vm759_vm13 = vcmp.eq.s32.totalorder %v713_v36, %v2110_v54  ;;  %vm569_vm0 = vcmp.eq.s32.totalorder %v2472_v42, %v2110_v54  ;;  %v442_v42 = vsel %vm410_vm6, 1, %v2800_v28 }
 0x166   : > { %v1014_v37 = vadd.s32 %v982_v47, %v822_v27  ;;  %v1058_v41 = vpack.c.bf16 %v1030_v26, %v1029_v30  ;;  %v791_v60 = vsel %vm759_vm13, 1, %v2800_v28  ;;  %v601_v10 = vsel %vm569_vm0, 1, %v2800_v28 }
 0x167   : > { %v860_v3 = vpop.permute.xlu0 %859  ;;  %v823_v56 = vadd.s32 %v791_v60, %v631_v23  ;;  %v602_v27 = vsel %vm570_vm2, 1, %v2800_v28  ;;  %v633_v47 = vadd.s32 %v601_v10, %v441_v53 }
 0x168   : > { %v1046_v6 = vcvt.s32.f32 %v1014_v37  ;;  %v671_v52 = vpop.permute.xlu1 %670  ;;  %1605 = vmatmul.mubr.bf16.gmra.mrb[4].mxu0 %v1058_v41  ;;  %vm936_vm7 = vcmp.eq.s32.totalorder %v860_v3, %v2110_v54  ;;  %v634_v41 = vadd.s32 %v602_v27, %v442_v42 }
 0x169   : > { %v968_v25 = vsel %vm936_vm7, 1, %v2800_v28  ;;  %vm745_vm12 = vcmp.eq.s32.totalorder %v671_v52, %v2110_v54 }
 0x16a   : > { %v1066_v50 = vpack.c.bf16 %v1046_v6, %v1045_v38  ;;  %v1000_v12 = vadd.s32 %v968_v25, %v808_v58  ;;  %v777_v1 = vsel %vm745_vm12, 1, %v2800_v28 }
 0x16b   : > { %v863_v40 = vpop.permute.xlu0 %862  ;;  %v809_v46 = vadd.s32 %v777_v1, %v617_v7  ;;  %v2812_v1 = vld [vmem:[#allocation5_spill] sm:$0xff]  ;;  %v2814_v7 = vld [vmem:[#allocation10_spill] sm:$0xff] }
 0x16c   : > { %v719_v4 = vpop.permute.xlu1 %718  ;;  %1621 = vmatmul.mubr.bf16.gmra.mrb[4].mxu1 %v1066_v50  ;;  %v1032_v20 = vcvt.s32.f32 %v1000_v12  ;;  %vm937_vm3 = vcmp.eq.s32.totalorder %v863_v40, %v2110_v54  ;;  %v2810_v40 = vld [vmem:[#allocation13_spill] sm:$0xff]  ;;  %vm398_vm2 = vcmp.eq.s32.totalorder %v2812_v1, %v2110_v54  ;;  %vm412_vm4 = vcmp.eq.s32.totalorder %v2814_v7, %v2110_v54 }
 0x16d   : > { %vm761_vm5 = vcmp.eq.s32.totalorder %v719_v4, %v2110_v54  ;;  %v969_v29 = vsel %vm937_vm3, 1, %v2800_v28  ;;  %v794_v4 = vsel %vm762_vm9, 1, %v2800_v28  ;;  %vm556_vm13 = vcmp.eq.s32.totalorder %v2810_v40, %v2110_v54 }
 0x16e   : > { %v793_v26 = vsel %vm761_vm5, 1, %v2800_v28  ;;  %v1001_v38 = vadd.s32 %v969_v29, %v809_v46  ;;  %v826_v32 = vadd.s32 %v794_v4, %v634_v41  ;;  %v588_v8 = vsel %vm556_vm13, 1, %v2800_v28 }
 0x16f   : > { %v911_v33 = vpop.permute.xlu0 %910  ;;  %v825_v52 = vadd.s32 %v793_v26, %v633_v47  ;;  %v430_v10 = vsel %vm398_vm2, 1, %v2800_v28 }
 0x170   : > { %vm953_vm8 = vcmp.eq.s32.totalorder %v911_v33, %v2110_v54  ;;  %v1033_v15 = vcvt.s32.f32 %v1001_v38  ;;  %v2816_v38 = vld [vmem:[#allocation11_spill] sm:$0xff] }
 0x171   : > { %v857_v9 = vpop.permute.xlu1 %856  ;;  %v985_v55 = vsel %vm953_vm8, 1, %v2800_v28  ;;  %vm414_vm13 = vcmp.eq.s32.totalorder %v2816_v38, %v2110_v54 }
 0x172   : > { %vm935_vm14 = vcmp.eq.s32.totalorder %v857_v9, %v2110_v54  ;;  %v1017_v17 = vadd.s32 %v985_v55, %v825_v52  ;;  %v2817_v52 = vld [vmem:[#allocation15_spill] sm:$0xff] }
 0x173   : > { %v967_v57 = vsel %vm935_vm14, 1, %v2800_v28 }
 0x174   : > { %v999_v14 = vadd.s32 %v967_v57, %v807_v19  ;;  %v1049_v24 = vcvt.s32.f32 %v1017_v17  ;;  %v2811_v57 = vld [vmem:[#allocation4_spill] sm:$0xff] }
 0x175   : > { %v905_v35 = vpop.permute.xlu1 %904  ;;  %vm396_vm14 = vcmp.eq.s32.totalorder %v2811_v57, %v2110_v54 }
 0x176   : > { %v1031_v11 = vcvt.s32.f32 %v999_v14  ;;  %vm951_vm1 = vcmp.eq.s32.totalorder %v905_v35, %v2110_v54  ;;  %v428_v14 = vsel %vm396_vm14, 1, %v2800_v28  ;;  %v872_v35 = vpop.permute.xlu0 %871 }
 0x177   : > { %v983_v39 = vsel %vm951_vm1, 1, %v2800_v28  ;;  %v620_v23 = vadd.s32 %v588_v8, %v428_v14  ;;  %vm940_vm0 = vcmp.eq.s32.totalorder %v872_v35, %v2110_v54 }
 0x178   : > { %v1059_v13 = vpack.c.bf16 %v1032_v20, %v1031_v11  ;;  %v1015_v30 = vadd.s32 %v983_v39, %v823_v56  ;;  %v2813_v11 = vld [vmem:[#allocation6_spill] sm:$0xff]  ;;  %v972_v61 = vsel %vm940_vm0, 1, %v2800_v28  ;;  %vm750_vm0 = vcmp.eq.s32.totalorder %v2357_v43, %v2110_v54 }
 0x179   : > { %v908_v51 = vpop.permute.xlu1 %907  ;;  %vm397_vm3 = vcmp.eq.s32.totalorder %v2813_v11, %v2110_v54  ;;  %v2815_v39 = vld [vmem:[#allocation14_spill] sm:$0xff] }
 0x17a   : > { %vm952_vm7 = vcmp.eq.s32.totalorder %v908_v51, %v2110_v54  ;;  %1608 = vmatprep.mubr.bf16.mxu0 %v1059_v13  ;;  %v1047_v3 = vcvt.s32.f32 %v1015_v30  ;;  %vm557_vm5 = vcmp.eq.s32.totalorder %v2815_v39, %v2110_v54  ;;  %v429_v33 = vsel %vm397_vm3, 1, %v2800_v28  ;;  %v875_v29 = vpop.permute.xlu0 %874 }
 0x17b   : > { %v984_v36 = vsel %vm952_vm7, 1, %v2800_v28  ;;  %v444_v51 = vsel %vm412_vm4, 1, %v2800_v28  ;;  %v589_v27 = vsel %vm557_vm5, 1, %v2800_v28  ;;  %vm766_vm3 = vcmp.eq.s32.totalorder %v2385_v59, %v2110_v54 }
 0x17c   : > { %v1016_v37 = vadd.s32 %v984_v36, %v2230_v5  ;;  %v798_v40 = vsel %vm766_vm3, 1, %v2800_v28 }
 0x17d   : > { %v866_v6 = vpop.permute.xlu1 %865 }
 0x17e   : > { %v1048_v50 = vcvt.s32.f32 %v1016_v37  ;;  %vm938_vm10 = vcmp.eq.s32.totalorder %v866_v6, %v2110_v54  ;;  %v621_v6 = vadd.s32 %v589_v27, %v429_v33  ;;  %v1072_v33 = vld [vmem:[#allocation2 + $0x8] sm:$0xff] }
 0x17f   : > { %v970_v21 = vsel %vm938_vm10, 1, %v2800_v28  ;;  %vm764_vm10 = vcmp.eq.s32.totalorder %v2273_v2, %v2110_v54 }
 0x180   : > { %v1002_v63 = vadd.s32 %v970_v21, %v2240_v0  ;;  %v1067_v5 = vpack.c.bf16 %v1048_v50, %v1047_v3  ;;  %v796_v2 = vsel %vm764_vm10, 1, %v2800_v28 }
 0x181   : > { %v914_v44 = vpop.permute.xlu1 %913 }
 0x182   : > { %v1034_v45 = vcvt.s32.f32 %v1002_v63  ;;  %vm954_vm11 = vcmp.eq.s32.totalorder %v914_v44, %v2110_v54  ;;  %1624 = vmatprep.mubr.bf16.mxu1 %v1067_v5  ;;  %v923_v63 = vpop.permute.xlu0 %922 }
 0x183   : > { %v986_v62 = vsel %vm954_vm11, 1, %v2800_v28  ;;  %vm957_vm4 = vcmp.eq.s32.totalorder %v923_v63, %v2110_v54 }
 0x184   : > { %v1018_v25 = vadd.s32 %v986_v62, %v826_v32  ;;  %v1060_v58 = vpack.c.bf16 %v1034_v45, %v1033_v15  ;;  %v446_v15 = vsel %vm414_vm13, 1, %v2800_v28  ;;  %v782_v45 = vsel %vm750_vm0, 1, %v2800_v28 }
 0x186   : > { %v1050_v18 = vcvt.s32.f32 %v1018_v25  ;;  %v536_v48 = vpop.permute.xlu1 %535  ;;  %1609 = vmatmul.mubr.bf16.gmra.mrb[8].mxu0 %v1060_v58 }
 0x187   : > { %vm572_vm1 = vcmp.eq.s32.totalorder %v536_v48, %v2110_v54 }
 0x188   : > { %v1068_v19 = vpack.c.bf16 %v1050_v18, %v1049_v24  ;;  %v604_v56 = vsel %vm572_vm1, 1, %v2800_v28  ;;  %vm941_vm1 = vcmp.eq.s32.totalorder %v875_v29, %v2110_v54 }
 0x189   : > { %v636_v53 = vadd.s32 %v604_v56, %v444_v51  ;;  %v973_v62 = vsel %vm941_vm1, 1, %v2800_v28  ;;  %v1071_v56 = vld [vmem:[#allocation2] sm:$0xff] }
 0x18a   : > { %v494_v9 = vpop.permute.xlu1 %493  ;;  %1625 = vmatmul.mubr.bf16.gmra.mrb[8].mxu1 %v1068_v19  ;;  %v2818_v19 = vld [vmem:[#allocation16_spill] sm:$0xff] }
 0x18b   : > { %vm558_vm6 = vcmp.eq.s32.totalorder %v494_v9, %v2110_v54  ;;  %v828_v32 = vadd.s32 %v796_v2, %v636_v53 }
 0x18c   : > { %v590_v26 = vsel %vm558_vm6, 1, %v2800_v28 }
 0x18d   : > { %v622_v55 = vadd.s32 %v590_v26, %v430_v10 }
 0x18e   : > { %v542_v0 = vpop.permute.xlu1 %541 }
 0x18f   : > { %vm574_vm14 = vcmp.eq.s32.totalorder %v542_v0, %v2110_v54  ;;  %v814_v48 = vadd.s32 %v782_v45, %v622_v55 }
 0x190   : > { %v606_v5 = vsel %vm574_vm14, 1, %v2800_v28 }
 0x191   : > { %v638_v58 = vadd.s32 %v606_v5, %v446_v15  ;;  %v1075_v5 = vld [vmem:[#allocation2 + $0x20] sm:$0xff]  ;;  %v1078_v15 = vld [vmem:[#allocation2 + $0x38] sm:$0xff] }
 0x193   : > { %v680_v16 = vpop.permute.xlu1 %679  ;;  %v830_v14 = vadd.s32 %v798_v40, %v638_v58 }
 0x194   : > { %vm748_vm12 = vcmp.eq.s32.totalorder %v680_v16, %v2110_v54 }
 0x195   : > { %v780_v31 = vsel %vm748_vm12, 1, %v2800_v28 }
 0x196   : > { %v812_v20 = vadd.s32 %v780_v31, %v620_v23 }
 0x197   : > { %v725_v12 = vpop.permute.xlu1 %724 }
 0x198   : > { %v1004_v22 = vadd.s32 %v972_v61, %v812_v20  ;;  %vm763_vm7 = vcmp.eq.s32.totalorder %v725_v12, %v2110_v54  ;;  %v1073_v61 = vld [vmem:[#allocation2 + $0x10] sm:$0xff] }
 0x199   : > { %v795_v36 = vsel %vm763_vm7, 1, %v2800_v28 }
 0x19a   : > { %v1036_v47 = vcvt.s32.f32 %v1004_v22  ;;  %v827_v3 = vadd.s32 %v795_v36, %v2817_v52  ;;  %v1074_v22 = vld [vmem:[#allocation2 + $0x18] sm:$0xff] }
 0x19b   : > { %v683_v34 = vpop.permute.xlu1 %682  ;;  %v1090_v36 = vld [vmem:[#allocation2 + $0x98] sm:$0xff] }
 0x19c   : > { %vm749_vm9 = vcmp.eq.s32.totalorder %v683_v34, %v2110_v54  ;;  %v989_v34 = vsel %vm957_vm4, 1, %v2800_v28 }
 0x19d   : > { %v781_v37 = vsel %vm749_vm9, 1, %v2800_v28 }
 0x19e   : > { %v813_v21 = vadd.s32 %v781_v37, %v621_v6  ;;  %v1088_v37 = vld [vmem:[#allocation2 + $0x88] sm:$0xff] }
 0x19f   : > { %v731_v60 = vpop.permute.xlu1 %730 }
 0x1a0   : > { %vm765_vm12 = vcmp.eq.s32.totalorder %v731_v60, %v2110_v54  ;;  %v1005_v24 = vadd.s32 %v973_v62, %v813_v21  ;;  %v1076_v62 = vld [vmem:[#allocation2 + $0x28] sm:$0xff] }
 0x1a1   : > { %v797_v43 = vsel %vm765_vm12, 1, %v2800_v28 }
 0x1a2   : > { %v829_v9 = vadd.s32 %v797_v43, %v2818_v19  ;;  %v1037_v31 = vcvt.s32.f32 %v1005_v24  ;;  %v1093_v24 = vld [vmem:[#allocation2 + $0xb0] sm:$0xff]  ;;  %v1091_v19 = vld [vmem:[#allocation2 + $0xa0] sm:$0xff] }
 0x1a4   : > { %v869_v13 = vpop.permute.xlu1 %868  ;;  %v1021_v23 = vadd.s32 %v989_v34, %v829_v9 }
 0x1a5   : > { %vm939_vm8 = vcmp.eq.s32.totalorder %v869_v13, %v2110_v54 }
 0x1a6   : > { %v971_v46 = vsel %vm939_vm8, 1, %v2800_v28  ;;  %v1053_v11 = vcvt.s32.f32 %v1021_v23 }
 0x1a7   : > { %v1003_v30 = vadd.s32 %v971_v46, %v2265_v49 }
 0x1a8   : > { %v917_v42 = vpop.permute.xlu1 %916 }
 0x1a9   : > { %v1035_v41 = vcvt.s32.f32 %v1003_v30  ;;  %vm955_vm11 = vcmp.eq.s32.totalorder %v917_v42, %v2110_v54  ;;  %v1087_v30 = vld [vmem:[#allocation2 + $0x80] sm:$0xff] }
 0x1aa   : > { %v987_v49 = vsel %vm955_vm11, 1, %v2800_v28 }
 0x1ab   : > { %v1061_v50 = vpack.c.bf16 %v1036_v47, %v1035_v41  ;;  %v1019_v44 = vadd.s32 %v987_v49, %v827_v3 }
 0x1ac   : > { %v920_v4 = vpop.permute.xlu1 %919 }
 0x1ad   : > { %vm956_vm2 = vcmp.eq.s32.totalorder %v920_v4, %v2110_v54  ;;  %1612 = vmatprep.mubr.bf16.mxu0 %v1061_v50  ;;  %v1051_v0 = vcvt.s32.f32 %v1019_v44  ;;  %v1077_v4 = vld [vmem:[#allocation2 + $0x30] sm:$0xff] }
 0x1ae   : > { %v988_v17 = vsel %vm956_vm2, 1, %v2800_v28 }
 0x1af   : > { %v1020_v25 = vadd.s32 %v988_v17, %v828_v32 }
 0x1b0   : > { %v878_v18 = vpop.permute.xlu1 %877 }
 0x1b1   : > { %v1052_v16 = vcvt.s32.f32 %v1020_v25  ;;  %vm942_vm5 = vcmp.eq.s32.totalorder %v878_v18, %v2110_v54 }
 0x1b2   : > { %v974_v12 = vsel %vm942_vm5, 1, %v2800_v28 }
 0x1b3   : > { %v1006_v59 = vadd.s32 %v974_v12, %v814_v48  ;;  %v1069_v57 = vpack.c.bf16 %v1052_v16, %v1051_v0  ;;  %v1094_v16 = vld [vmem:[#allocation2 + $0xb8] sm:$0xff] }
 0x1b4   : > { %v926_v8 = vpop.permute.xlu1 %925 }
 0x1b5   : > { %v1038_v60 = vcvt.s32.f32 %v1006_v59  ;;  %vm958_vm6 = vcmp.eq.s32.totalorder %v926_v8, %v2110_v54  ;;  %1628 = vmatprep.mubr.bf16.mxu1 %v1069_v57  ;;  %v1089_v54 = vld [vmem:[#allocation2 + $0x90] sm:$0xff]  ;;  %v1092_v59 = vld [vmem:[#allocation2 + $0xa8] sm:$0xff] }
 0x1b6   : > { %v990_v35 = vsel %vm958_vm6, 1, %v2800_v28 }
 0x1b7   : > { %v1022_v20 = vadd.s32 %v990_v35, %v830_v14  ;;  %v1062_v1 = vpack.c.bf16 %v1038_v60, %v1037_v31 }
 0x1b9   : > { %v1054_v7 = vcvt.s32.f32 %v1022_v20  ;;  %1613 = vmatmul.mubr.bf16.gmra.mrb[12].mxu0 %v1062_v1 }
 0x1bb   : > { %v1070_v39 = vpack.c.bf16 %v1054_v7, %v1053_v11 }
 0x1bd   : > { %1629 = vmatmul.mubr.bf16.gmra.mrb[12].mxu1 %v1070_v39 }
 0x22b   : > { %v1602_v13 = vpop.f32.mrb[0].mxu0 }
 0x22c   : > { %v1330_v10 = vadd.f32 %v1602_v13, %v1073_v61  ;;  %v1201_v46 = vpop.f32.mrb[1].mxu0  ;;  %v1081_v61 = vld [vmem:[#allocation2 + $0x50] sm:$0xff] }
 0x22d   : > { %v1328_v51 = vadd.f32 %v1201_v46, %v1071_v56  ;;  %v1603_v27 = vpop.f32.mrb[2].mxu0  ;;  %v1079_v56 = vld [vmem:[#allocation2 + $0x40] sm:$0xff] }
 0x22e   : > { %1363 = vst.msk [vmem:[#allocation2 + $0x10] sm:$0xff] %vm186_vm15, %v1330_v10  ;;  %v1331_v28 = vadd.f32 %v1603_v27, %v1074_v22  ;;  %v1204_v29 = vpop.f32.mrb[3].mxu0  ;;  %v1082_v22 = vld [vmem:[#allocation2 + $0x58] sm:$0xff] }
 0x22f   : > { %1361 = vst.msk [vmem:[#allocation2] sm:$0xff] %vm186_vm15, %v1328_v51  ;;  %v1329_v53 = vadd.f32 %v1204_v29, %v1072_v33  ;;  %v1618_v26 = vpop.f32.mrb[0].mxu1  ;;  %v1080_v33 = vld [vmem:[#allocation2 + $0x48] sm:$0xff] }
 0x230   : > { %1364 = vst.msk [vmem:[#allocation2 + $0x18] sm:$0xff] %vm186_vm15, %v1331_v28  ;;  %v1346_v42 = vadd.f32 %v1618_v26, %v1089_v54  ;;  %v1265_v47 = vpop.f32.mrb[1].mxu1  ;;  %v1097_v54 = vld [vmem:[#allocation2 + $0xd0] sm:$0xff] }
 0x231   : > { %1362 = vst.msk [vmem:[#allocation2 + $0x8] sm:$0xff] %vm186_vm15, %v1329_v53  ;;  %v1344_v41 = vadd.f32 %v1265_v47, %v1087_v30  ;;  %v1619_v38 = vpop.f32.mrb[2].mxu1  ;;  %v1095_v30 = vld [vmem:[#allocation2 + $0xc0] sm:$0xff] }
 0x232   : > { %1379 = vst.msk [vmem:[#allocation2 + $0x90] sm:$0xff] %vm186_vm15, %v1346_v42  ;;  %v1347_v6 = vadd.f32 %v1619_v38, %v1090_v36  ;;  %v1268_v49 = vpop.f32.mrb[3].mxu1  ;;  %v1098_v36 = vld [vmem:[#allocation2 + $0xd8] sm:$0xff] }
 0x233   : > { %1377 = vst.msk [vmem:[#allocation2 + $0x80] sm:$0xff] %vm186_vm15, %v1344_v41  ;;  %v1345_v2 = vadd.f32 %v1268_v49, %v1088_v37  ;;  %v1096_v37 = vld [vmem:[#allocation2 + $0xc8] sm:$0xff] }
 0x234   : > { %1380 = vst.msk [vmem:[#allocation2 + $0x98] sm:$0xff] %vm186_vm15, %v1347_v6 }
 0x235   : > { %v1398_v52 = vld [vmem:[#allocation2 + $0x10] sm:$0xff]  ;;  %1378 = vst.msk [vmem:[#allocation2 + $0x88] sm:$0xff] %vm186_vm15, %v1345_v2 }
 0x236   : > { %1430 = vst.msk [vmem:[%s2675_s8 + $0x10] sm:$0xff] %vm186_vm15, %v1398_v52  ;;  %v1396_v3 = vld [vmem:[#allocation2] sm:$0xff] }
 0x237   : > { %1428 = vst.msk [vmem:[%s2675_s8] sm:$0xff] %vm186_vm15, %v1396_v3  ;;  %v1399_v50 = vld [vmem:[#allocation2 + $0x18] sm:$0xff] }
 0x238   : > { %1431 = vst.msk [vmem:[%s2675_s8 + $0x18] sm:$0xff] %vm186_vm15, %v1399_v50  ;;  %v1397_v55 = vld [vmem:[#allocation2 + $0x8] sm:$0xff] }
 0x239   : > { %1429 = vst.msk [vmem:[%s2675_s8 + $0x8] sm:$0xff] %vm186_vm15, %v1397_v55  ;;  %v1414_v21 = vld [vmem:[#allocation2 + $0x90] sm:$0xff] }
 0x23a   : > { %1446 = vst.msk [vmem:[%s2675_s8 + $0x90] sm:$0xff] %vm186_vm15, %v1414_v21  ;;  %v1412_v63 = vld [vmem:[#allocation2 + $0x80] sm:$0xff] }
 0x23b   : > { %1444 = vst.msk [vmem:[%s2675_s8 + $0x80] sm:$0xff] %vm186_vm15, %v1412_v63  ;;  %v1415_v44 = vld [vmem:[#allocation2 + $0x98] sm:$0xff]  ;;  %v1606_v32 = vpop.f32.mrb[4].mxu0 }
 0x23c   : > { %1447 = vst.msk [vmem:[%s2675_s8 + $0x98] sm:$0xff] %vm186_vm15, %v1415_v44  ;;  %v1413_v43 = vld [vmem:[#allocation2 + $0x88] sm:$0xff]  ;;  %v1334_v17 = vadd.f32 %v1606_v32, %v1077_v4  ;;  %v1217_v45 = vpop.f32.mrb[5].mxu0  ;;  %v1085_v44 = vld [vmem:[#allocation2 + $0x70] sm:$0xff]  ;;  %v1083_v32 = vld [vmem:[#allocation2 + $0x60] sm:$0xff] }
 0x23d   : > { %1445 = vst.msk [vmem:[%s2675_s8 + $0x88] sm:$0xff] %vm186_vm15, %v1413_v43  ;;  %v1332_v25 = vadd.f32 %v1217_v45, %v1075_v5  ;;  %v1607_v58 = vpop.f32.mrb[6].mxu0  ;;  %v1086_v43 = vld [vmem:[#allocation2 + $0x78] sm:$0xff] }
 0x23e   : > { %1367 = vst.msk [vmem:[#allocation2 + $0x30] sm:$0xff] %vm186_vm15, %v1334_v17  ;;  %v1335_v18 = vadd.f32 %v1607_v58, %v1078_v15  ;;  %v1220_v48 = vpop.f32.mrb[7].mxu0 }
 0x23f   : > { %1365 = vst.msk [vmem:[#allocation2 + $0x20] sm:$0xff] %vm186_vm15, %v1332_v25  ;;  %v1333_v9 = vadd.f32 %v1220_v48, %v1076_v62  ;;  %v1622_v0 = vpop.f32.mrb[4].mxu1  ;;  %v1084_v62 = vld [vmem:[#allocation2 + $0x68] sm:$0xff] }
 0x240   : > { %1368 = vst.msk [vmem:[#allocation2 + $0x38] sm:$0xff] %vm186_vm15, %v1335_v18  ;;  %v1350_v12 = vadd.f32 %v1622_v0, %v1093_v24  ;;  %v1281_v40 = vpop.f32.mrb[5].mxu1  ;;  %v1101_v24 = vld [vmem:[#allocation2 + $0xf0] sm:$0xff] }
 0x241   : > { %1366 = vst.msk [vmem:[#allocation2 + $0x28] sm:$0xff] %vm186_vm15, %v1333_v9  ;;  %v1348_v57 = vadd.f32 %v1281_v40, %v1091_v19  ;;  %v1623_v34 = vpop.f32.mrb[6].mxu1  ;;  %v1099_v19 = vld [vmem:[#allocation2 + $0xe0] sm:$0xff] }
 0x242   : > { %1383 = vst.msk [vmem:[#allocation2 + $0xb0] sm:$0xff] %vm186_vm15, %v1350_v12  ;;  %v1351_v8 = vadd.f32 %v1623_v34, %v1094_v16  ;;  %v1284_v14 = vpop.f32.mrb[7].mxu1  ;;  %v1102_v16 = vld [vmem:[#allocation2 + $0xf8] sm:$0xff] }
 0x243   : > { %1381 = vst.msk [vmem:[#allocation2 + $0xa0] sm:$0xff] %vm186_vm15, %v1348_v57  ;;  %v1349_v31 = vadd.f32 %v1284_v14, %v1092_v59  ;;  %v1100_v59 = vld [vmem:[#allocation2 + $0xe8] sm:$0xff] }
 0x244   : > { %1384 = vst.msk [vmem:[#allocation2 + $0xb8] sm:$0xff] %vm186_vm15, %v1351_v8 }
 0x245   : > { %v1402_v23 = vld [vmem:[#allocation2 + $0x30] sm:$0xff]  ;;  %1382 = vst.msk [vmem:[#allocation2 + $0xa8] sm:$0xff] %vm186_vm15, %v1349_v31 }
 0x246   : > { %1434 = vst.msk [vmem:[%s2675_s8 + $0x30] sm:$0xff] %vm186_vm15, %v1402_v23  ;;  %v1400_v60 = vld [vmem:[#allocation2 + $0x20] sm:$0xff] }
 0x247   : > { %1432 = vst.msk [vmem:[%s2675_s8 + $0x20] sm:$0xff] %vm186_vm15, %v1400_v60  ;;  %v1403_v35 = vld [vmem:[#allocation2 + $0x38] sm:$0xff] }
 0x248   : > { %1435 = vst.msk [vmem:[%s2675_s8 + $0x38] sm:$0xff] %vm186_vm15, %v1403_v35  ;;  %v1401_v20 = vld [vmem:[#allocation2 + $0x28] sm:$0xff] }
 0x249   : > { %1433 = vst.msk [vmem:[%s2675_s8 + $0x28] sm:$0xff] %vm186_vm15, %v1401_v20  ;;  %v1418_v1 = vld [vmem:[#allocation2 + $0xb0] sm:$0xff] }
 0x24a   : > { %1450 = vst.msk [vmem:[%s2675_s8 + $0xb0] sm:$0xff] %vm186_vm15, %v1418_v1  ;;  %v1416_v11 = vld [vmem:[#allocation2 + $0xa0] sm:$0xff] }
 0x24b   : > { %1448 = vst.msk [vmem:[%s2675_s8 + $0xa0] sm:$0xff] %vm186_vm15, %v1416_v11  ;;  %v1419_v7 = vld [vmem:[#allocation2 + $0xb8] sm:$0xff] }
 0x24c   : > { %1451 = vst.msk [vmem:[%s2675_s8 + $0xb8] sm:$0xff] %vm186_vm15, %v1419_v7  ;;  %v1417_v39 = vld [vmem:[#allocation2 + $0xa8] sm:$0xff] }
 0x24d   : > { %1449 = vst.msk [vmem:[%s2675_s8 + $0xa8] sm:$0xff] %vm186_vm15, %v1417_v39 }
 0x259   : > { %v1610_v13 = vpop.f32.mrb[8].mxu0 }
 0x25a   : > { %v1338_v10 = vadd.f32 %v1610_v13, %v1081_v61  ;;  %v1233_v46 = vpop.f32.mrb[9].mxu0 }
 0x25b   : > { %v1336_v51 = vadd.f32 %v1233_v46, %v1079_v56  ;;  %v1611_v27 = vpop.f32.mrb[10].mxu0 }
 0x25c   : > { %1371 = vst.msk [vmem:[#allocation2 + $0x50] sm:$0xff] %vm186_vm15, %v1338_v10  ;;  %v1339_v28 = vadd.f32 %v1611_v27, %v1082_v22  ;;  %v1236_v29 = vpop.f32.mrb[11].mxu0 }
 0x25d   : > { %1369 = vst.msk [vmem:[#allocation2 + $0x40] sm:$0xff] %vm186_vm15, %v1336_v51  ;;  %v1337_v53 = vadd.f32 %v1236_v29, %v1080_v33  ;;  %v1626_v26 = vpop.f32.mrb[8].mxu1 }
 0x25e   : > { %1372 = vst.msk [vmem:[#allocation2 + $0x58] sm:$0xff] %vm186_vm15, %v1339_v28  ;;  %v1354_v42 = vadd.f32 %v1626_v26, %v1097_v54  ;;  %v1297_v47 = vpop.f32.mrb[9].mxu1 }
 0x25f   : > { %1370 = vst.msk [vmem:[#allocation2 + $0x48] sm:$0xff] %vm186_vm15, %v1337_v53  ;;  %v1352_v41 = vadd.f32 %v1297_v47, %v1095_v30  ;;  %v1627_v38 = vpop.f32.mrb[10].mxu1 }
 0x260   : > { %1387 = vst.msk [vmem:[#allocation2 + $0xd0] sm:$0xff] %vm186_vm15, %v1354_v42  ;;  %v1355_v6 = vadd.f32 %v1627_v38, %v1098_v36  ;;  %v1300_v49 = vpop.f32.mrb[11].mxu1 }
 0x261   : > { %1385 = vst.msk [vmem:[#allocation2 + $0xc0] sm:$0xff] %vm186_vm15, %v1352_v41  ;;  %v1353_v2 = vadd.f32 %v1300_v49, %v1096_v37 }
 0x262   : > { %1388 = vst.msk [vmem:[#allocation2 + $0xd8] sm:$0xff] %vm186_vm15, %v1355_v6 }
 0x263   : > { %v1406_v52 = vld [vmem:[#allocation2 + $0x50] sm:$0xff]  ;;  %1386 = vst.msk [vmem:[#allocation2 + $0xc8] sm:$0xff] %vm186_vm15, %v1353_v2 }
 0x264   : > { %1438 = vst.msk [vmem:[%s2675_s8 + $0x50] sm:$0xff] %vm186_vm15, %v1406_v52  ;;  %v1404_v3 = vld [vmem:[#allocation2 + $0x40] sm:$0xff] }
 0x265   : > { %1436 = vst.msk [vmem:[%s2675_s8 + $0x40] sm:$0xff] %vm186_vm15, %v1404_v3  ;;  %v1407_v50 = vld [vmem:[#allocation2 + $0x58] sm:$0xff] }
 0x266   : > { %1439 = vst.msk [vmem:[%s2675_s8 + $0x58] sm:$0xff] %vm186_vm15, %v1407_v50  ;;  %v1405_v55 = vld [vmem:[#allocation2 + $0x48] sm:$0xff] }
 0x267   : > { %1437 = vst.msk [vmem:[%s2675_s8 + $0x48] sm:$0xff] %vm186_vm15, %v1405_v55  ;;  %v1422_v21 = vld [vmem:[#allocation2 + $0xd0] sm:$0xff] }
 0x268   : > { %1454 = vst.msk [vmem:[%s2675_s8 + $0xd0] sm:$0xff] %vm186_vm15, %v1422_v21  ;;  %v1420_v4 = vld [vmem:[#allocation2 + $0xc0] sm:$0xff] }
 0x269   : > { %1452 = vst.msk [vmem:[%s2675_s8 + $0xc0] sm:$0xff] %vm186_vm15, %v1420_v4  ;;  %v1423_v63 = vld [vmem:[#allocation2 + $0xd8] sm:$0xff] }
 0x26a   : > { %1455 = vst.msk [vmem:[%s2675_s8 + $0xd8] sm:$0xff] %vm186_vm15, %v1423_v63  ;;  %v1421_v5 = vld [vmem:[#allocation2 + $0xc8] sm:$0xff] }
 0x26b   : > { %1453 = vst.msk [vmem:[%s2675_s8 + $0xc8] sm:$0xff] %vm186_vm15, %v1421_v5 }
 0x28c   : > { %v1614_v15 = vpop.f32.mrb[12].mxu0 }
 0x28d   : > { %v1342_v17 = vadd.f32 %v1614_v15, %v1085_v44  ;;  %v1249_v45 = vpop.f32.mrb[13].mxu0 }
 0x28e   : > { %v1340_v25 = vadd.f32 %v1249_v45, %v1083_v32  ;;  %v1615_v58 = vpop.f32.mrb[14].mxu0 }
 0x28f   : > { %1375 = vst.msk [vmem:[#allocation2 + $0x70] sm:$0xff] %vm186_vm15, %v1342_v17  ;;  %v1343_v18 = vadd.f32 %v1615_v58, %v1086_v43  ;;  %v1252_v48 = vpop.f32.mrb[15].mxu0 }
 0x290   : > { %1373 = vst.msk [vmem:[#allocation2 + $0x60] sm:$0xff] %vm186_vm15, %v1340_v25  ;;  %v1341_v9 = vadd.f32 %v1252_v48, %v1084_v62  ;;  %v1630_v0 = vpop.f32.mrb[12].mxu1 }
 0x291   : > { %1376 = vst.msk [vmem:[#allocation2 + $0x78] sm:$0xff] %vm186_vm15, %v1343_v18  ;;  %v1358_v12 = vadd.f32 %v1630_v0, %v1101_v24  ;;  %v1313_v40 = vpop.f32.mrb[13].mxu1 }
 0x292   : > { %1374 = vst.msk [vmem:[#allocation2 + $0x68] sm:$0xff] %vm186_vm15, %v1341_v9  ;;  %v1356_v57 = vadd.f32 %v1313_v40, %v1099_v19  ;;  %v1631_v34 = vpop.f32.mrb[14].mxu1 }
 0x293   : > { %1391 = vst.msk [vmem:[#allocation2 + $0xf0] sm:$0xff] %vm186_vm15, %v1358_v12  ;;  %v1359_v8 = vadd.f32 %v1631_v34, %v1102_v16  ;;  %v1316_v14 = vpop.f32.mrb[15].mxu1 }
 0x294   : > { %1389 = vst.msk [vmem:[#allocation2 + $0xe0] sm:$0xff] %vm186_vm15, %v1356_v57  ;;  %v1357_v31 = vadd.f32 %v1316_v14, %v1100_v59 }
 0x295   : > { %1392 = vst.msk [vmem:[#allocation2 + $0xf8] sm:$0xff] %vm186_vm15, %v1359_v8 }
 0x296   : > { %v1410_v23 = vld [vmem:[#allocation2 + $0x70] sm:$0xff]  ;;  %1390 = vst.msk [vmem:[#allocation2 + $0xe8] sm:$0xff] %vm186_vm15, %v1357_v31 }
 0x297   : > { %1442 = vst.msk [vmem:[%s2675_s8 + $0x70] sm:$0xff] %vm186_vm15, %v1410_v23  ;;  %v1408_v60 = vld [vmem:[#allocation2 + $0x60] sm:$0xff] }
 0x298   : > { %1440 = vst.msk [vmem:[%s2675_s8 + $0x60] sm:$0xff] %vm186_vm15, %v1408_v60  ;;  %v1411_v35 = vld [vmem:[#allocation2 + $0x78] sm:$0xff] }
 0x299   : > { %1443 = vst.msk [vmem:[%s2675_s8 + $0x78] sm:$0xff] %vm186_vm15, %v1411_v35  ;;  %v1409_v20 = vld [vmem:[#allocation2 + $0x68] sm:$0xff] }
 0x29a   : > { %1441 = vst.msk [vmem:[%s2675_s8 + $0x68] sm:$0xff] %vm186_vm15, %v1409_v20  ;;  %v1426_v1 = vld [vmem:[#allocation2 + $0xf0] sm:$0xff] }
 0x29b   : > { %1458 = vst.msk [vmem:[%s2675_s8 + $0xf0] sm:$0xff] %vm186_vm15, %v1426_v1  ;;  %v1424_v11 = vld [vmem:[#allocation2 + $0xe0] sm:$0xff] }
 0x29c   : > { %1456 = vst.msk [vmem:[%s2675_s8 + $0xe0] sm:$0xff] %vm186_vm15, %v1424_v11  ;;  %v1427_v7 = vld [vmem:[#allocation2 + $0xf8] sm:$0xff] }
 0x29d   : > { %1459 = vst.msk [vmem:[%s2675_s8 + $0xf8] sm:$0xff] %vm186_vm15, %v1427_v7  ;;  %v1425_v39 = vld [vmem:[#allocation2 + $0xe8] sm:$0xff] }
 0x29e   : > { %1457 = vst.msk [vmem:[%s2675_s8 + $0xe8] sm:$0xff] %vm186_vm15, %v1425_v39 }
 0x29f PF: > { %s12_s11 = sadd.s32 1, %s1724_s11   ;;  %s2819_s9 = smov %s1720_s10 }
 0x2a0   : > { %p9_p5 = scmp.ge.s32.totalorder %s12_s11, 4   ;;  %s2820_s10 = smov %s2822_s12 }
 0x2a2   :  { %11 = sbr.rel (!%p9_p5) target bundleno = 2 (0x2), region = 69 }

</bundles_post_ra>
